<compile_context>
chip_gen: v7x
topology: tpu7x:2x2x1
jax: 0.10.0
libtpu: 0.0.40
codegen_flags: <defaults>
</compile_context>

<pallas_src>
import jax
import jax.numpy as jnp
from jax.experimental import pallas as pl
from jax.experimental.pallas import tpu as pltpu


IN_DIM = 3
HIDDEN = 32

# ---------------------------------------------------------------------------
# Packed parameter slab layout: (40, 128) f32, one resident DMA.
#   rows [0,32) cols [0,32)  : W2^T
#   rows [0,32) cols [32,35) : W1^T
#   rows [0,32) col 35       : b1   (stored as a column -> broadcasts over lanes)
#   rows [0,32) col 36       : b2   (column)
#   rows 32,33  cols [0,32)  : wp, wv (policy/value head weights, as rows)
#   row  34     cols 0,1     : bp, bv
# ---------------------------------------------------------------------------
PAR_ROWS, PAR_COLS = 40, 128
_C_W2T = 0
_C_W1T = HIDDEN
_C_B1 = _C_W1T + IN_DIM
_C_B2 = _C_B1 + 1
_R_WH = HIDDEN
_R_BH = _R_WH + 2


def pack_params(p):
    H = HIDDEN
    s = jnp.zeros((PAR_ROWS, PAR_COLS), jnp.float32)
    s = s.at[0:H, _C_W2T:_C_W2T + H].set(p["w2"].T)
    s = s.at[0:H, _C_W1T:_C_W1T + IN_DIM].set(p["w1"].T)
    s = s.at[0:H, _C_B1].set(p["b1"])
    s = s.at[0:H, _C_B2].set(p["b2"])
    s = s.at[_R_WH, 0:H].set(p["wp"])
    s = s.at[_R_WH + 1, 0:H].set(p["wv"])
    s = s.at[_R_BH, 0].set(p["bp"])
    s = s.at[_R_BH, 1].set(p["bv"])
    return s


# ---------------------------------------------------------------------------
# Pallas kernel: fused batched forward pass, BT graphs per grid step.
# Layout: activations are (H, BT*N) with lane index r = b*N + n.
# ---------------------------------------------------------------------------
def _make_gnn_kernel(n_nodes, bt):
    btn = bt * n_nodes
    H = HIDDEN

    def kernel(prop_ref, xm_ref, par_ref, out_ref):
        f32 = jnp.float32
        a_exp = prop_ref[...]                                  # (BTN, BTN) = I_BT (x) A^T

        w2T = par_ref[0:H, _C_W2T:_C_W2T + H]                  # (H, H) = W2^T
        b1c = par_ref[0:H, _C_B1:_C_B1 + 1]                    # (H, 1)
        b2c = par_ref[0:H, _C_B2:_C_B2 + 1]                    # (H, 1)
        whT = par_ref[_R_WH:_R_WH + 2, 0:H]                    # (2, H): [wp; wv]
        bp = par_ref[_R_BH:_R_BH + 1, 0:1]                     # (1, 1)
        bv = par_ref[_R_BH:_R_BH + 1, 1:2]                     # (1, 1)

        # ---- conv1: X @ W1 via 3 VPU broadcast-FMAs (K=3 too shallow for MXU),
        #      then one shared-adjacency propagation matmul over all BT graphs.
        h = par_ref[0:H, _C_W1T:_C_W1T + 1] * xm_ref[0:1, :]   # (H, BTN)
        for k in range(1, IN_DIM):
            h = h + par_ref[0:H, _C_W1T + k:_C_W1T + k + 1] * xm_ref[k:k + 1, :]
        h = jnp.dot(h, a_exp, preferred_element_type=f32)      # (H, BTN)
        h = jnp.maximum(h + b1c, 0.0)

        # ---- conv2: W2^T @ h, propagate, bias, relu ----
        h = jnp.dot(w2T, h, preferred_element_type=f32)        # (H, BTN)
        h = jnp.dot(h, a_exp, preferred_element_type=f32)      # (H, BTN)
        h = jnp.maximum(h + b2c, 0.0)

        # ---- fused policy+value heads: one (2,H)@(H,BTN) matmul ----
        heads = jnp.dot(whT, h, preferred_element_type=f32)    # (2, BTN)

        # policy logits + precomputed additive legal mask (row 3 of the xm slab)
        logits = heads[0:1, :] + bp + xm_ref[IN_DIM:IN_DIM + 1, :]      # (1, BTN)

        # value: per-graph mean over its N nodes via a small pooling matmul
        r = jax.lax.broadcasted_iota(jnp.int32, (btn, bt), 0)
        c = jax.lax.broadcasted_iota(jnp.int32, (btn, bt), 1)
        pool = jnp.where((r >= c * n_nodes) & (r < (c + 1) * n_nodes),
                         1.0 / n_nodes, 0.0).astype(f32)                # (BTN, BT)
        v = jnp.tanh(jnp.dot(heads[1:2, :], pool, preferred_element_type=f32) + bv)
        v_row = jnp.concatenate(
            [v, jnp.zeros((1, btn - bt), f32)], axis=1)                 # (1, BTN)

        # single lane-dense (384-wide) store: row 0 = logits, row 1 = values
        out_ref[...] = jnp.concatenate([logits, v_row], axis=0)         # (2, BTN)

    return kernel


# ---------------------------------------------------------------------------
# Glue: edge_index -> dense normalized adjacency (PyG gcn_norm), scatter-free.
# Computed ONCE per graph topology and reused across forward calls.
# ---------------------------------------------------------------------------
def gcn_normalized_adjacency(edge_index, num_nodes):
    src, tgt = edge_index[0], edge_index[1]
    src_oh = jax.nn.one_hot(src, num_nodes, dtype=jnp.float32)   # (E, N)
    tgt_oh = jax.nn.one_hot(tgt, num_nodes, dtype=jnp.float32)   # (E, N)
    a = tgt_oh.T @ src_oh                                        # A[t, s] = #edges s->t
    a_hat = a + jnp.eye(num_nodes, dtype=jnp.float32)            # add self-loops
    deg = a_hat.sum(axis=1)
    dinv = jnp.where(deg > 0, jax.lax.rsqrt(deg), 0.0)
    return dinv[:, None] * a_hat * dinv[None, :]


def build_prop_operator(adj_norm, batch_tile):
    """Block-diagonal propagation operator I_BT (x) A_norm^T (built once, reused)."""
    return jnp.kron(jnp.eye(batch_tile, dtype=jnp.float32),
                    adj_norm.T.astype(jnp.float32))


def gnn_forward(x, prop_op, param_slab, legal_mask, *, batch_tile=16):
    """x: (B, N, 3) f32; prop_op: (BT*N, BT*N) f32; legal_mask: (B, N) 0/1 f32."""
    B, N, F = x.shape
    assert F == IN_DIM
    BT = batch_tile
    assert B % BT == 0
    G = B // BT
    BTN = BT * N
    assert prop_op.shape == (BTN, BTN)
    H = HIDDEN

    # Channels-on-sublanes layout (lane r = b*N + n); features and the additive
    # legal mask share one (4, B*N) slab -> one input DMA per grid step.
    x_t = jnp.transpose(x.astype(jnp.float32), (2, 0, 1)).reshape(F, B * N)
    mask_add = ((1.0 - legal_mask.astype(jnp.float32)) * (-1e9)).reshape(1, B * N)
    xm = jnp.concatenate([x_t, mask_add], axis=0)                       # (4, B*N)

    flops_step = (2 * 2 * H * BTN * BTN            # two propagation matmuls
                  + 2 * H * BTN * (IN_DIM + H + 2)  # conv1 FMAs, W2, heads
                  + 2 * BTN * BT)                  # value pooling
    bytes_accessed = 4 * (prop_op.size + xm.size + param_slab.size + 2 * G * BTN)

    out = pl.pallas_call(
        _make_gnn_kernel(N, BT),
        out_shape=jax.ShapeDtypeStruct((2, G * BTN), jnp.float32),
        grid=(G,),
        in_specs=[
            pl.BlockSpec((BTN, BTN), lambda t: (0, 0)),        # propagation op: resident
            pl.BlockSpec((4, BTN), lambda t: (0, t)),          # per-tile features + mask
            pl.BlockSpec((PAR_ROWS, PAR_COLS), lambda t: (0, 0)),  # packed params: resident
        ],
        out_specs=pl.BlockSpec((2, BTN), lambda t: (0, t)),    # lane-dense output slab
        compiler_params=pltpu.CompilerParams(
            dimension_semantics=("parallel",)),                # 2 TCs on v7x
        cost_estimate=pl.CostEstimate(
            flops=G * flops_step, transcendentals=B, bytes_accessed=bytes_accessed),
    )(prop_op, xm, param_slab)

    logits = out[0].reshape(B, N)
    v = out[1].reshape(G, BTN)[:, :BT].reshape(B)
    return logits, v


# ---------------------------------------------------------------------------
# Deterministic parameter init (shapes from the module's __init__).
# ---------------------------------------------------------------------------
def init_params(key, in_dim=IN_DIM, hidden_dim=HIDDEN):
    ks = jax.random.split(key, 8)
    s = 0.1
    return {
        "w1": s * jax.random.normal(ks[0], (in_dim, hidden_dim), jnp.float32),
        "b1": s * jax.random.normal(ks[1], (hidden_dim,), jnp.float32),
        "w2": s * jax.random.normal(ks[2], (hidden_dim, hidden_dim), jnp.float32),
        "b2": s * jax.random.normal(ks[3], (hidden_dim,), jnp.float32),
        "wp": s * jax.random.normal(ks[4], (hidden_dim,), jnp.float32),
        "bp": s * jax.random.normal(ks[5], (), jnp.float32),
        "wv": s * jax.random.normal(ks[6], (hidden_dim,), jnp.float32),
        "bv": s * jax.random.normal(ks[7], (), jnp.float32),
    }


# Pure-JAX f32 reference (matches the PyTorch forward semantics).
def gnn_reference(x, adj, p, legal_mask):
    def gcn(h, w, b):
        return jnp.einsum('nm,bmh->bnh', adj, jnp.einsum('bnf,fh->bnh', h, w)) + b
    h = jax.nn.relu(gcn(x, p["w1"], p["b1"]))
    h = jax.nn.relu(gcn(h, p["w2"], p["b2"]))
    logits = jnp.einsum('bnh,h->bn', h, p["wp"]) + p["bp"]
    logits = jnp.where(legal_mask == 0, -1e9, logits)
    v = jnp.tanh(h.mean(axis=1) @ p["wv"] + p["bv"])
    return logits, v


if __name__ == "__main__":
    key = jax.random.PRNGKey(0)
    n = 3
    N = 2 * n * (n + 1)          # 24 line-graph nodes (edges of the base graph)
    B, BT = 64, 16               # 64 graphs per call, 16 per grid step -> grid=(4,)

    k_x, k_p, k_m = jax.random.split(key, 3)
    x = jax.random.normal(k_x, (B, N, IN_DIM), jnp.float32)

    # shared line-graph connectivity (synthetic bidirectional ring), static per size
    idx = jnp.arange(N)
    src = jnp.concatenate([idx, (idx + 1) % N])
    tgt = jnp.concatenate([(idx + 1) % N, idx])
    edge_index = jnp.stack([src, tgt], axis=0)                  # [2, 2N]

    legal_mask = (jax.random.uniform(k_m, (B, N)) > 0.25).astype(jnp.float32)

    params = init_params(k_p)
    par_slab = pack_params(params)
    adj_norm = gcn_normalized_adjacency(edge_index, N)          # computed once, reused
    prop_op = build_prop_operator(adj_norm, BT)                 # computed once, reused

    fwd = jax.jit(gnn_forward, static_argnames=("batch_tile",))
    logits, v = fwd(x, prop_op, par_slab, legal_mask, batch_tile=BT)
    jax.block_until_ready((logits, v))

    assert logits.shape == (B, N) and v.shape == (B,)

    # sanity check vs. pure-JAX f32 reference
    # (additive -1e9 mask vs masked_fill differs by ~1e-9 relative on masked lanes;
    #  covered by the rtol term of allclose)
    ref_logits, ref_v = gnn_reference(x, adj_norm, params, legal_mask)
    assert jnp.allclose(logits, ref_logits, rtol=2e-2, atol=2e-2), \
        float(jnp.max(jnp.abs(logits - ref_logits)))
    assert jnp.allclose(v, ref_v, rtol=2e-2, atol=2e-2), \
        float(jnp.max(jnp.abs(v - ref_v)))

    print("KERNEL_OK")
</pallas_src>

<mosaic_0001>
module attributes {stable_mosaic.version = 11 : i64} {
  func.func @kernel(%arg0: i32, %arg1: memref<384x384xf32, #tpu.memory_space<vmem>>, %arg2: memref<4x384xf32, #tpu.memory_space<vmem>>, %arg3: memref<40x128xf32, #tpu.memory_space<vmem>>, %arg4: memref<2x384xf32, #tpu.memory_space<vmem>>) attributes {dimension_semantics = [#tpu.dimension_semantics<parallel>], iteration_bounds = array<i64: 4>, scalar_prefetch = 0 : i64, scratch_operands = 0 : i64, tpu.core_type = #tpu.core_type<tc>, window_params = [{pipeline_mode = #tpu.pipeline_mode<synchronous>, transform_indices = @transform_0, window_bounds = array<i64: 384, 384>}, {transform_indices = @transform_1, window_bounds = array<i64: 4, 384>}, {pipeline_mode = #tpu.pipeline_mode<synchronous>, transform_indices = @transform_2, window_bounds = array<i64: 40, 128>}, {transform_indices = @transform_3, window_bounds = array<i64: 2, 384>}]} {
    %c0 = arith.constant 0 : index
    %c0_0 = arith.constant 0 : index
    %0 = vector.load %arg1[%c0, %c0_0] : memref<384x384xf32, #tpu.memory_space<vmem>>, vector<384x384xf32>
    %c0_1 = arith.constant 0 : index
    %c0_2 = arith.constant 0 : index
    %1 = vector.load %arg3[%c0_1, %c0_2] : memref<40x128xf32, #tpu.memory_space<vmem>>, vector<32x32xf32>
    %c0_3 = arith.constant 0 : index
    %c35 = arith.constant 35 : index
    %2 = vector.load %arg3[%c0_3, %c35] : memref<40x128xf32, #tpu.memory_space<vmem>>, vector<32x1xf32>
    %c0_4 = arith.constant 0 : index
    %c36 = arith.constant 36 : index
    %3 = vector.load %arg3[%c0_4, %c36] : memref<40x128xf32, #tpu.memory_space<vmem>>, vector<32x1xf32>
    %c32 = arith.constant 32 : index
    %c0_5 = arith.constant 0 : index
    %4 = vector.load %arg3[%c32, %c0_5] : memref<40x128xf32, #tpu.memory_space<vmem>>, vector<2x32xf32>
    %c34 = arith.constant 34 : index
    %c0_6 = arith.constant 0 : index
    %5 = vector.load %arg3[%c34, %c0_6] : memref<40x128xf32, #tpu.memory_space<vmem>>, vector<1x1xf32>
    %c34_7 = arith.constant 34 : index
    %c1 = arith.constant 1 : index
    %6 = vector.load %arg3[%c34_7, %c1] : memref<40x128xf32, #tpu.memory_space<vmem>>, vector<1x1xf32>
    %c0_8 = arith.constant 0 : index
    %c32_9 = arith.constant 32 : index
    %7 = vector.load %arg3[%c0_8, %c32_9] : memref<40x128xf32, #tpu.memory_space<vmem>>, vector<32x1xf32>
    %c0_10 = arith.constant 0 : index
    %c0_11 = arith.constant 0 : index
    %8 = vector.load %arg2[%c0_10, %c0_11] : memref<4x384xf32, #tpu.memory_space<vmem>>, vector<1x384xf32>
    %9 = vector.broadcast %7 : vector<32x1xf32> to vector<32x384xf32>
    %10 = vector.broadcast %8 : vector<1x384xf32> to vector<32x384xf32>
    %11 = arith.mulf %9, %10 : vector<32x384xf32>
    %c0_12 = arith.constant 0 : index
    %c33 = arith.constant 33 : index
    %12 = vector.load %arg3[%c0_12, %c33] : memref<40x128xf32, #tpu.memory_space<vmem>>, vector<32x1xf32>
    %c1_13 = arith.constant 1 : index
    %c0_14 = arith.constant 0 : index
    %13 = vector.load %arg2[%c1_13, %c0_14] : memref<4x384xf32, #tpu.memory_space<vmem>>, vector<1x384xf32>
    %14 = vector.broadcast %12 : vector<32x1xf32> to vector<32x384xf32>
    %15 = vector.broadcast %13 : vector<1x384xf32> to vector<32x384xf32>
    %16 = arith.mulf %14, %15 : vector<32x384xf32>
    %17 = arith.addf %11, %16 : vector<32x384xf32>
    %c0_15 = arith.constant 0 : index
    %c34_16 = arith.constant 34 : index
    %18 = vector.load %arg3[%c0_15, %c34_16] : memref<40x128xf32, #tpu.memory_space<vmem>>, vector<32x1xf32>
    %c2 = arith.constant 2 : index
    %c0_17 = arith.constant 0 : index
    %19 = vector.load %arg2[%c2, %c0_17] : memref<4x384xf32, #tpu.memory_space<vmem>>, vector<1x384xf32>
    %20 = vector.broadcast %18 : vector<32x1xf32> to vector<32x384xf32>
    %21 = vector.broadcast %19 : vector<1x384xf32> to vector<32x384xf32>
    %22 = arith.mulf %20, %21 : vector<32x384xf32>
    %23 = arith.addf %17, %22 : vector<32x384xf32>
    %cst = arith.constant dense<0.000000e+00> : vector<32x384xf32>
    %24 = tpu.matmul %23, %0, %cst {dimension_numbers = #tpu.dot_dimension_numbers<[1], [0], [0], [1], [0, 0, 1, 1], [], []>} : vector<32x384xf32>, vector<384x384xf32>, vector<32x384xf32> -> vector<32x384xf32>
    %25 = vector.broadcast %2 : vector<32x1xf32> to vector<32x384xf32>
    %26 = arith.addf %24, %25 : vector<32x384xf32>
    %cst_18 = arith.constant 0.000000e+00 : f32
    %27 = vector.broadcast %cst_18 : f32 to vector<32x384xf32>
    %28 = arith.maximumf %26, %27 : vector<32x384xf32>
    %cst_19 = arith.constant dense<0.000000e+00> : vector<32x384xf32>
    %29 = tpu.matmul %1, %28, %cst_19 {dimension_numbers = #tpu.dot_dimension_numbers<[1], [0], [0], [1], [0, 0, 1, 1], [], []>} : vector<32x32xf32>, vector<32x384xf32>, vector<32x384xf32> -> vector<32x384xf32>
    %cst_20 = arith.constant dense<0.000000e+00> : vector<32x384xf32>
    %30 = tpu.matmul %29, %0, %cst_20 {dimension_numbers = #tpu.dot_dimension_numbers<[1], [0], [0], [1], [0, 0, 1, 1], [], []>} : vector<32x384xf32>, vector<384x384xf32>, vector<32x384xf32> -> vector<32x384xf32>
    %31 = vector.broadcast %3 : vector<32x1xf32> to vector<32x384xf32>
    %32 = arith.addf %30, %31 : vector<32x384xf32>
    %cst_21 = arith.constant 0.000000e+00 : f32
    %33 = vector.broadcast %cst_21 : f32 to vector<32x384xf32>
    %34 = arith.maximumf %32, %33 : vector<32x384xf32>
    %cst_22 = arith.constant dense<0.000000e+00> : vector<2x384xf32>
    %35 = tpu.matmul %4, %34, %cst_22 {dimension_numbers = #tpu.dot_dimension_numbers<[1], [0], [0], [1], [0, 0, 1, 1], [], []>} : vector<2x32xf32>, vector<32x384xf32>, vector<2x384xf32> -> vector<2x384xf32>
    %36 = vector.extract_strided_slice %35 {offsets = [0, 0], sizes = [1, 384], strides = [1, 1]} : vector<2x384xf32> to vector<1x384xf32>
    %37 = vector.broadcast %5 : vector<1x1xf32> to vector<1x384xf32>
    %38 = arith.addf %36, %37 : vector<1x384xf32>
    %c3 = arith.constant 3 : index
    %c0_23 = arith.constant 0 : index
    %39 = vector.load %arg2[%c3, %c0_23] : memref<4x384xf32, #tpu.memory_space<vmem>>, vector<1x384xf32>
    %40 = arith.addf %38, %39 : vector<1x384xf32>
    %41 = tpu.iota {dimensions = array<i32: 0>} : vector<384x16xi32>
    %42 = tpu.iota {dimensions = array<i32: 1>} : vector<384x16xi32>
    %c24_i32 = arith.constant 24 : i32
    %43 = vector.broadcast %c24_i32 : i32 to vector<384x16xi32>
    %44 = arith.muli %42, %43 : vector<384x16xi32>
    %45 = arith.cmpi sge, %41, %44 : vector<384x16xi32>
    %c1_i32 = arith.constant 1 : i32
    %46 = vector.broadcast %c1_i32 : i32 to vector<384x16xi32>
    %47 = arith.addi %42, %46 : vector<384x16xi32>
    %c24_i32_24 = arith.constant 24 : i32
    %48 = vector.broadcast %c24_i32_24 : i32 to vector<384x16xi32>
    %49 = arith.muli %47, %48 : vector<384x16xi32>
    %50 = arith.cmpi slt, %41, %49 : vector<384x16xi32>
    %51 = arith.andi %45, %50 : vector<384x16xi1>
    %cst_25 = arith.constant 0.0416666679 : f32
    %cst_26 = arith.constant 0.000000e+00 : f32
    %52 = vector.broadcast %cst_25 : f32 to vector<384x16xf32>
    %53 = vector.broadcast %cst_26 : f32 to vector<384x16xf32>
    %54 = arith.select %51, %52, %53 : vector<384x16xi1>, vector<384x16xf32>
    %55 = vector.extract_strided_slice %35 {offsets = [1, 0], sizes = [1, 384], strides = [1, 1]} : vector<2x384xf32> to vector<1x384xf32>
    %cst_27 = arith.constant dense<0.000000e+00> : vector<1x16xf32>
    %56 = tpu.matmul %55, %54, %cst_27 {dimension_numbers = #tpu.dot_dimension_numbers<[1], [0], [0], [1], [0, 0, 1, 1], [], []>} : vector<1x384xf32>, vector<384x16xf32>, vector<1x16xf32> -> vector<1x16xf32>
    %57 = vector.broadcast %6 : vector<1x1xf32> to vector<1x16xf32>
    %58 = arith.addf %56, %57 : vector<1x16xf32>
    %59 = math.tanh %58 : vector<1x16xf32>
    %cst_28 = arith.constant 0.000000e+00 : f32
    %60 = vector.broadcast %cst_28 : f32 to vector<1x368xf32>
    %61 = tpu.concatenate %59, %60 in 1 : vector<1x16xf32>, vector<1x368xf32> -> vector<1x384xf32>
    %62 = tpu.concatenate %40, %61 in 0 : vector<1x384xf32>, vector<1x384xf32> -> vector<2x384xf32>
    %c0_29 = arith.constant 0 : index
    %c0_30 = arith.constant 0 : index
    %63 = vector.load %arg4[%c0_29, %c0_30] : memref<2x384xf32, #tpu.memory_space<vmem>>, vector<2x384xf32>
    tpu.vector_store %arg4[%c0_29, %c0_30], %62 {strides = array<i32>} : memref<2x384xf32, #tpu.memory_space<vmem>>, vector<2x384xf32>,
    return
  }
  func.func @transform_0(%arg0: i32) -> (i32, i32) {
    %c0_i32 = arith.constant 0 : i32
    %c0_i32_0 = arith.constant 0 : i32
    %c0_i32_1 = arith.constant 0 : i32
    return %c0_i32, %c0_i32_0 : i32, i32
  }
  func.func @transform_1(%arg0: i32) -> (i32, i32) {
    %c0_i32 = arith.constant 0 : i32
    %c0_i32_0 = arith.constant 0 : i32
    return %c0_i32, %arg0 : i32, i32
  }
  func.func @transform_2(%arg0: i32) -> (i32, i32) {
    %c0_i32 = arith.constant 0 : i32
    %c0_i32_0 = arith.constant 0 : i32
    %c0_i32_1 = arith.constant 0 : i32
    return %c0_i32, %c0_i32_0 : i32, i32
  }
  func.func @transform_3(%arg0: i32) -> (i32, i32) {
    %c0_i32 = arith.constant 0 : i32
    %c0_i32_0 = arith.constant 0 : i32
    return %c0_i32, %arg0 : i32, i32
  }
}

</mosaic_0001>

<bundles_post_ra>
// kernel: squeeze.2
= control target key start
LH: loop header
LB: loop body
LE: loop exit
PB: predicated region body
PF: predicated region fallthrough
CT: control target
= control target key end

     0   :  { %vm123_vm0 = vcmask 916480   ;;  %vm140_vm1 = vcmask 982016   ;;  %s215_s14 = smov 16   ;;  %s216_s17 = smov 120   ;;  %vm3_vm2 = vcmask 195584   ;;  %vm127_vm3 = vcmask 130048   ;;  %s430_s0 = inlined_call_operand.vmem [shape: f32[1536], index: 0, kind: input, shape index: {}]   ;;  %s431_s1 = inlined_call_operand.vmem [shape: f32[64,24], index: 1, kind: output, shape index: {}]  }
   0x1   :  { %v189_v0 = vld [vmem:[%s430_s0 + $0x1] ss:$3 sm:$0xf]   ;;  %v190_v1 = vld [vmem:[%s430_s0 + $0x2] ss:$3 sm:$0xf]  }
   0x2   :  { %v124_v2 = vsel %vm123_vm0, %v190_v1, %v189_v0  ;;  %v137_v3 = vld [vmem:[%s430_s0] ss:$3 sm:$0xf]   ;;  %v195_v4 = vld [vmem:[%s430_s0 + $0x1] ss:$3 sm:$0xf]  }
   0x3   :  { %125 = vrot.lane.b32.xlu0 %v124_v2, %s215_s14  ;;  %v154_v5 = vld [vmem:[%s430_s0 + $0x2] ss:$3 sm:$0xf]   ;;  %v141_v6 = vsel %vm140_vm1, %v195_v4, %v137_v3  ;;  %v157_v7 = vld [vmem:[%s430_s0 + $0x1] ss:$3 sm:$0xf]  }
   0x4   :  { %8 = vrot.lane.b32.xlu1 %v154_v5, %s216_s17  ;;  %s217_s20 = smov 8   ;;  %v24_v8 = vld [vmem:[%s430_s0] ss:$3 sm:$0xf]   ;;  %s218_s23 = smov 112   ;;  %vm132_vm4 = vcmask 195712  }
   0x5   :  { %v162_v9 = vld [vmem:[%s430_s0 + $0x2] ss:$3 sm:$0xf]   ;;  %s219_s26 = smov 104   ;;  %s220_s29 = smov 96   ;;  %vm144_vm5 = vcmask 64512  }
   0x6   :  { %v165_v10 = vld [vmem:[%s430_s0 + $0x1] ss:$3 sm:$0xf]   ;;  %v50_v11 = vld [vmem:[%s430_s0] ss:$3 sm:$0xf]  }
   0x7   :  { %142 = vrot.lane.b32.xlu0 %v141_v6, %s217_s20  ;;  %s221_s3 = smov 88   ;;  %v170_v12 = vld [vmem:[%s430_s0 + $0x2] ss:$3 sm:$0xf]   ;;  %s222_s6 = smov 80   ;;  %vm149_vm6 = vcmask 195648  }
   0x8   :  { %17 = vrot.lane.b32.xlu1 %v157_v7, %s218_s23  ;;  %v173_v13 = vld [vmem:[%s430_s0 + $0x1] ss:$3 sm:$0xf]   ;;  %v2_v14 = vld [vmem:[%s430_s0] ss:$3 sm:$0xf]  }
   0x9   :  { %4 = vst.msk [vmem:[%s431_s1] ss:$16 sm:$0x3] %vm3_vm2, %v2_v14   ;;  %5 = vst.msk [vmem:[%s431_s1] ss:$16 sm:$0xc] %vm3_vm2, %v2_v14  }
   0xa   :  { %s223_s15 = smov 72   ;;  %v76_v15 = vld [vmem:[%s430_s0] ss:$3 sm:$0xf]   ;;  %s224_s18 = smov 64  }
   0xb   :  { %25 = vrot.lane.b32.xlu0 %v24_v8, %s219_s26  ;;  %v178_v16 = vld [vmem:[%s430_s0 + $0x2] ss:$3 sm:$0xf]   ;;  %s225_s21 = smov 56   ;;  %s226_s24 = smov 48  }
   0xc   :  { %34 = vrot.lane.b32.xlu1 %v162_v9, %s220_s29  ;;  %v181_v17 = vld [vmem:[%s430_s0 + $0x1] ss:$3 sm:$0xf]   ;;  %v102_v18 = vld [vmem:[%s430_s0] ss:$3 sm:$0xf]  }
   0xd   :  { %s227_s27 = smov 40   ;;  %v186_v19 = vld [vmem:[%s430_s0 + $0x2] ss:$3 sm:$0xf]   ;;  %s228_s0 = smov 32  }
   0xe   :  { %s229_s30 = smov 24  }
   0xf   :  { %43 = vrot.lane.b32.xlu0 %v165_v10, %s221_s3 }
  0x10   :  { %51 = vrot.lane.b32.xlu1 %v50_v11, %s222_s6 }
  0x13   :  { %60 = vrot.lane.b32.xlu0 %v170_v12, %s223_s15 }
  0x14   :  { %69 = vrot.lane.b32.xlu1 %v173_v13, %s224_s18 }
  0x17   :  { %77 = vrot.lane.b32.xlu0 %v76_v15, %s225_s21 }
  0x18   :  { %86 = vrot.lane.b32.xlu1 %v178_v16, %s226_s24 }
  0x1b   :  { %95 = vrot.lane.b32.xlu0 %v181_v17, %s227_s27 }
  0x1c   :  { %103 = vrot.lane.b32.xlu1 %v102_v18, %s228_s0 }
  0x1f   :  { %112 = vrot.lane.b32.xlu0 %v186_v19, %s229_s30 }
  0x75   :  { %v126_v20 = vpop.permute.xlu0 %125  }
  0x76   :  { %191 = vst.msk [vmem:[%s431_s1 + $0xa] ss:$16 sm:$0x3] %vm127_vm3, %v126_v20   ;;  %192 = vst.msk [vmem:[%s431_s1 + $0xa] ss:$16 sm:$0xc] %vm127_vm3, %v126_v20   ;;  %v9_v21 = vpop.permute.xlu1 %8  }
  0x77   :  { %193 = vst.msk [vmem:[%s431_s1 + $0xa] ss:$16 sm:$0x3] %vm132_vm4, %v126_v20   ;;  %194 = vst.msk [vmem:[%s431_s1 + $0xa] ss:$16 sm:$0xc] %vm132_vm4, %v126_v20  }
  0x78   :  { %155 = vst.msk [vmem:[%s431_s1 + $0xb] ss:$16 sm:$0x3] %vm3_vm2, %v9_v21   ;;  %156 = vst.msk [vmem:[%s431_s1 + $0xb] ss:$16 sm:$0xc] %vm3_vm2, %v9_v21  }
  0x79   :  { %v143_v22 = vpop.permute.xlu0 %142  }
  0x7a   :  { %196 = vst.msk [vmem:[%s431_s1 + $0x5] ss:$16 sm:$0x3] %vm144_vm5, %v143_v22   ;;  %197 = vst.msk [vmem:[%s431_s1 + $0x5] ss:$16 sm:$0xc] %vm144_vm5, %v143_v22   ;;  %v18_v23 = vpop.permute.xlu1 %17  }
  0x7b   :  { %198 = vst.msk [vmem:[%s431_s1 + $0x5] ss:$16 sm:$0x3] %vm149_vm6, %v143_v22   ;;  %199 = vst.msk [vmem:[%s431_s1 + $0x5] ss:$16 sm:$0xc] %vm149_vm6, %v143_v22  }
  0x7c   :  { %158 = vst.msk [vmem:[%s431_s1 + $0x6] ss:$16 sm:$0x3] %vm3_vm2, %v18_v23   ;;  %159 = vst.msk [vmem:[%s431_s1 + $0x6] ss:$16 sm:$0xc] %vm3_vm2, %v18_v23  }
  0x7d   :  { %v26_v24 = vpop.permute.xlu0 %25  }
  0x7e   :  { %160 = vst.msk [vmem:[%s431_s1 + $0x1] ss:$16 sm:$0x3] %vm3_vm2, %v26_v24   ;;  %161 = vst.msk [vmem:[%s431_s1 + $0x1] ss:$16 sm:$0xc] %vm3_vm2, %v26_v24   ;;  %v35_v25 = vpop.permute.xlu1 %34  }
  0x7f   :  { %163 = vst.msk [vmem:[%s431_s1 + $0xc] ss:$16 sm:$0x3] %vm3_vm2, %v35_v25   ;;  %164 = vst.msk [vmem:[%s431_s1 + $0xc] ss:$16 sm:$0xc] %vm3_vm2, %v35_v25  }
  0x81   :  { %v44_v26 = vpop.permute.xlu0 %43  }
  0x82   :  { %166 = vst.msk [vmem:[%s431_s1 + $0x7] ss:$16 sm:$0x3] %vm3_vm2, %v44_v26   ;;  %167 = vst.msk [vmem:[%s431_s1 + $0x7] ss:$16 sm:$0xc] %vm3_vm2, %v44_v26   ;;  %v52_v27 = vpop.permute.xlu1 %51  }
  0x83   :  { %168 = vst.msk [vmem:[%s431_s1 + $0x2] ss:$16 sm:$0x3] %vm3_vm2, %v52_v27   ;;  %169 = vst.msk [vmem:[%s431_s1 + $0x2] ss:$16 sm:$0xc] %vm3_vm2, %v52_v27  }
  0x85   :  { %v61_v28 = vpop.permute.xlu0 %60  }
  0x86   :  { %171 = vst.msk [vmem:[%s431_s1 + $0xd] ss:$16 sm:$0x3] %vm3_vm2, %v61_v28   ;;  %172 = vst.msk [vmem:[%s431_s1 + $0xd] ss:$16 sm:$0xc] %vm3_vm2, %v61_v28   ;;  %v70_v29 = vpop.permute.xlu1 %69  }
  0x87   :  { %174 = vst.msk [vmem:[%s431_s1 + $0x8] ss:$16 sm:$0x3] %vm3_vm2, %v70_v29   ;;  %175 = vst.msk [vmem:[%s431_s1 + $0x8] ss:$16 sm:$0xc] %vm3_vm2, %v70_v29  }
  0x89   :  { %v78_v30 = vpop.permute.xlu0 %77  }
  0x8a   :  { %176 = vst.msk [vmem:[%s431_s1 + $0x3] ss:$16 sm:$0x3] %vm3_vm2, %v78_v30   ;;  %177 = vst.msk [vmem:[%s431_s1 + $0x3] ss:$16 sm:$0xc] %vm3_vm2, %v78_v30   ;;  %v87_v31 = vpop.permute.xlu1 %86  }
  0x8b   :  { %179 = vst.msk [vmem:[%s431_s1 + $0xe] ss:$16 sm:$0x3] %vm3_vm2, %v87_v31   ;;  %180 = vst.msk [vmem:[%s431_s1 + $0xe] ss:$16 sm:$0xc] %vm3_vm2, %v87_v31  }
  0x8d   :  { %v96_v32 = vpop.permute.xlu0 %95  }
  0x8e   :  { %182 = vst.msk [vmem:[%s431_s1 + $0x9] ss:$16 sm:$0x3] %vm3_vm2, %v96_v32   ;;  %183 = vst.msk [vmem:[%s431_s1 + $0x9] ss:$16 sm:$0xc] %vm3_vm2, %v96_v32   ;;  %v104_v33 = vpop.permute.xlu1 %103  }
  0x8f   :  { %184 = vst.msk [vmem:[%s431_s1 + $0x4] ss:$16 sm:$0x3] %vm3_vm2, %v104_v33   ;;  %185 = vst.msk [vmem:[%s431_s1 + $0x4] ss:$16 sm:$0xc] %vm3_vm2, %v104_v33  }
  0x91   :  { %v113_v34 = vpop.permute.xlu0 %112  }
  0x92   :  { %187 = vst.msk [vmem:[%s431_s1 + $0xf] ss:$16 sm:$0x3] %vm3_vm2, %v113_v34   ;;  %188 = vst.msk [vmem:[%s431_s1 + $0xf] ss:$16 sm:$0xc] %vm3_vm2, %v113_v34  }

// kernel: squeeze.3
= control target key start
LH: loop header
LB: loop body
LE: loop exit
PB: predicated region body
PF: predicated region fallthrough
CT: control target
= control target key end

     0   :  { %s60_s0 = inlined_call_operand.vmem [shape: f32[1536], index: 0, kind: input, shape index: {}]   ;;  %s61_s1 = inlined_call_operand.vmem [shape: f32[4,384], index: 1, kind: output, shape index: {}]  }
   0x1   :  { %v2_v0 = vld [vmem:[%s60_s0] sm:$0xff]   ;;  %v32_v1 = vld [vmem:[%s60_s0 + $0x8] sm:$0xf]  }
   0x2   :  { %3 = vst [vmem:[#allocation0] ss:$8 sm:$0x7] %v2_v0   ;;  %5 = vst [vmem:[#allocation0 - $0x17] ss:$8 sm:$0x38] %v2_v0  }
   0x3   :  { %7 = vst [vmem:[#allocation0 - $0x2e] ss:$8 sm:$0xc0] %v2_v0   ;;  %11 = vst [vmem:[#allocation0 + $0x12] ss:$-15 sm:$0x3] %v32_v1  }
   0x4   :  { %13 = vst [vmem:[#allocation0 - $0x5] ss:$8 sm:$0xc] %v32_v1  }
   0xa   :  { %v17_v2 = vld [vmem:[#allocation0] sm:$0xf] }
   0xb   :  { %v21_v3 = vld [vmem:[#allocation0 + $0x8] sm:$0xf]  ;;  %v26_v4 = vld [vmem:[#allocation0 + $0x10] sm:$0xf]  ;;  %19 = vst [vmem:[%s61_s1] sm:$0xf] %v17_v2 }
   0xc   :  { %33 = vst [vmem:[%s61_s1 + $0x4] sm:$0xf] %v21_v3  ;;  %34 = vst [vmem:[%s61_s1 + $0x8] sm:$0xf] %v26_v4 }

// kernel: gnn_forward.1
= control target key start
LH: loop header
LB: loop body
LE: loop exit
PB: predicated region body
PF: predicated region fallthrough
CT: control target
= control target key end

     0   :  { %8 = vsyncpa [#allocation3], 0  ;;  %s3084_s12 = smov 0   ;;  %s4100_s0 = inlined_call_operand.hbm [shape: f32[384,384], index: 0, kind: input, shape index: {}]   ;;  %s4101_s1 = inlined_call_operand.vmem [shape: f32[4,1536], index: 1, kind: input, shape index: {}]   ;;  %s4102_s2 = inlined_call_operand.vmem [shape: f32[40,128], index: 2, kind: input, shape index: {}]   ;;  %s4103_s3 = inlined_call_operand.vmem [shape: f32[2,1536], index: 3, kind: output, shape index: {}]  }
   0x1 LB: > { %s2113_s13 = sadd.s32 4294967295, %s3047_s12   ;;  %p2115_p0 = scmp.ge.s32.totalorder %s3047_s12, 1  ;;  %s3047_s12 = sphi %s3084_s12, %s14_s12  }
   0x2   : > { %p113_p1 = scmp.lt.s32.totalorder %s3047_s12, 5  ;;  %s3049_s14 = smov [#allocation2]  }
   0x3   : > { %s125_s15 = sshll.u32 %s3049_s14, 4  ;;  %p3098_p3 = scmp.eq.s32.totalorder %s2113_s13, 0  ;;  %s126_s15 = int_to_ptr.vmem [resolvable:$true] %s125_s15 }
   0x4   : > { %p3092_p2 = pnand %p2115_p0, %p113_p1  ;;  %s3009_s21 = scalar_lea.hbm %s4100_s0, 18432 }
   0x5   : > { %s4179_s17 = scalar_select %p3098_p3, 1, 0 }
   0x6   : > { %s4178_s16 = scalar_select %p3092_p2, 1, 0 }
   0x7   : > { %p2956_p4 = pneg %p3092_p2  ;;  %p3010_p6 = scmp.ne.s32.totalorder %s4100_s0, %s3009_s21 }
   0x8   : > { %p3016_p10 = scmp.lt.u32.totalorder %s3009_s21, %s4100_s0 }
   0x9   : > { %p3106_p5 = pnand %p3098_p3, %p2956_p4 }
   0xb   : > { %p3011_p7 = pneg %p3106_p5 }
   0xd   : > { %p3012_p8 = pnand %p3011_p7, %p3010_p6 }
   0xf   : > { %p3013_p9 = pneg %p3012_p8 }
  0x11   : > { %p3018_p11 = pnand %p3016_p10, %p3013_p9 }
  0x13   : > { %3021 = shalt.err (!%p3018_p11)
}
  0x14   : > { %s3022_s26 = scalar_lea.vmem %s126_s15, 18432  ;;  %p3030_p1 = scmp.lt.s32.totalorder %s126_s15, %s126_s15 }
  0x15   : > { %p3023_p12 = scmp.ne.s32.totalorder %s126_s15, %s3022_s26  ;;  %p3031_p4 = scmp.lt.s32.totalorder %s3022_s26, %s3022_s26 }
  0x17   : > { %p3025_p13 = pnand %p3023_p12, %p3011_p7  ;;  %p3032_p3 = por %p3031_p4, %p3030_p1 }
  0x19   : > { %p3026_p0 = pneg %p3025_p13 }
  0x1b   : > { %p3033_p2 = pnand %p3032_p3, %p3026_p0 }
  0x1d   : > { %3036 = shalt.err (!%p3033_p2)
}
  0x1e   : > { %s3050_s27 = smov 384   ;;  %s3051_s28 = smov 24  }
  0x1f   : > { %2959 = dma.hbm_to_vmem [thread:$0]  (!%p3106_p5), %s4100_s0, 18432, %s126_s15, [#allocation3], %s3050_s27, %s3050_s27, %s3051_s28  }
  0x20   : > { %p4181_p6 = scmp.ne.s32.totalorder %s4178_s16, 0 }
  0x22   : > { %153 = sbr.rel (%p4181_p6) target bundleno = 1392 (0x570), region = 32 }
  0x29   : > { %p4182_p8 = scmp.ne.s32.totalorder %s4179_s17, 0 }
  0x2b   : > { %3042 = dma.done.wait (%p4182_p8), [#allocation3], 18432  }
  0x2c   : > { %3044 = vsyncadd (%p4182_p8), [#allocation3], 4294948864  ;;  %v3052_v0 = vmov 34   ;;  %v3053_v1 = vmov 32   ;;  %v3137_v2 = vld [vmem:[%s4102_s2] sm:$0xff]  ;;  %v190_v3 = vld [vmem:[#allocation2 + $0x8] sm:$0xff] }
  0x2d   : > { %2987 = vset.pattern.permute.xlu1 %v3052_v0  ;;  %2985 = vset.pattern.permute.xlu0 %v3053_v1  ;;  %v193_v4 = vld [vmem:[#allocation2 + $0x20] sm:$0xff]  ;;  %v192_v7 = vld [vmem:[#allocation2 + $0x18] sm:$0xff]  ;;  %v3146_v9 = vld [vmem:[%s4102_s2 + $0x8] sm:$0xff]  ;;  %v3054_v13 = vmov 33   ;;  %s177_s14 = smul.u32 3, %s2113_s13  ;;  %vm4157_vm0 = vcmask 261120  }
  0x2e   : > { %449 = vperm.xlu1 %2987, %v3137_v2   ;;  %342 = vperm.xlu0 %2985, %v3137_v2   ;;  %v3141_v5 = vpack.c.bf16 %v193_v4, %v190_v3  ;;  %v189_v6 = vld [vmem:[#allocation2] sm:$0xff]  ;;  %v196_v8 = vld [vmem:[#allocation2 + $0x38] sm:$0xff]  ;;  %v199_v11 = vld [vmem:[#allocation2 + $0x50] sm:$0xff]  ;;  %vm4156_vm1 = vmmov 0  }
  0x2f   : > { %v3148_v10 = vpack.c.bf16 %v192_v7, %v189_v6  ;;  %v3151_v12 = vpack.c.bf16 %v199_v11, %v196_v8  ;;  %v195_v14 = vld [vmem:[#allocation2 + $0x30] sm:$0xff]  ;;  %v198_v15 = vld [vmem:[#allocation2 + $0x48] sm:$0xff]  ;;  %v205_v17 = vld [vmem:[#allocation2 + $0x80] sm:$0xff]  ;;  %p178_p2 = scmp.lt.s32.totalorder %s177_s14, 11 }
  0x30   : > { %2515 = vmatprep.subr.bf16.mxu0 %v3141_v5  ;;  %v202_v16 = vld [vmem:[#allocation2 + $0x68] sm:$0xff]  ;;  %v3158_v18 = vpack.c.bf16 %v198_v15, %v195_v14  ;;  %v201_v20 = vld [vmem:[#allocation2 + $0x60] sm:$0xff]  ;;  %v204_v21 = vld [vmem:[#allocation2 + $0x78] sm:$0xff] }
  0x31   : > { %4183 = vst [vmem:[#allocation5_spill] sm:$0xff] %v3148_v10  ;;  %4184 = vst [vmem:[#allocation6_spill] sm:$0xff] %v3151_v12  ;;  %2517 = vmatpush1.bf16.msra.mxu0 %v3148_v10  ;;  %v3160_v19 = vpack.c.bf16 %v205_v17, %v202_v16  ;;  %v208_v22 = vld [vmem:[#allocation2 + $0x98] sm:$0xff]  ;;  %v211_v23 = vld [vmem:[#allocation2 + $0xb0] sm:$0xff]  ;;  %v3171_v25 = vpack.c.bf16 %v204_v21, %v201_v20  ;;  %s4362_s14 = smov (!%p178_p2, %s177_s14), 11 }
  0x32   : > { %2988 = vset.pattern.permute.xlu1 %v3053_v1  ;;  %2986 = vset.pattern.permute.xlu0 %v3054_v13  ;;  %4185 = vst [vmem:[#allocation7_spill] sm:$0xff] %v3158_v18  ;;  %v3168_v24 = vld [vmem:[%s4102_s2 + $0x10] sm:$0xff]  ;;  %v3174_v27 = vpack.c.bf16 %v211_v23, %v208_v22  ;;  %v210_v29 = vld [vmem:[#allocation2 + $0xa8] sm:$0xff]  ;;  %v217_v35 = vld [vmem:[#allocation2 + $0xe0] sm:$0xff]  ;;  %s2120_s15 = sshll.u32 %s4362_s14, 2  ;;  %s2121_s30 = sshll.u32 %s4362_s14, 1 }
  0x33   : > { %347 = vperm.xlu1 %2988, %v3146_v9   ;;  %391 = vperm.xlu0 %2986, %v3137_v2   ;;  %4186 = vst [vmem:[#allocation8_spill] sm:$0xff] %v3160_v19  ;;  %4187 = vst [vmem:[#allocation9_spill] sm:$0xff] %v3171_v25  ;;  %v239_v26 = vld [vmem:[#allocation2 + $0x190] sm:$0xff]  ;;  %v242_v30 = vld [vmem:[#allocation2 + $0x1a8] sm:$0xff]  ;;  %s3336_s18 = scalar_lea.vmem %s4101_s1, %s2120_s15  ;;  %s187_s6 = scalar_lea.vmem %s4103_s3, %s2121_s30 }
  0x34   : > { %2519 = vmatprep.subr.bf16.mxu0 %v3151_v12  ;;  %4188 = vst [vmem:[#allocation10_spill] sm:$0xff] %v3174_v27  ;;  %v207_v28 = vld [vmem:[#allocation2 + $0x90] sm:$0xff]  ;;  %v214_v31 = vld [vmem:[#allocation2 + $0xc8] sm:$0xff]  ;;  %v3176_v32 = vpack.c.bf16 %v242_v30, %v239_v26  ;;  %v245_v37 = vld [vmem:[#allocation2 + $0x1c0] sm:$0xff] }
  0x35   : > { %2521 = vmatpush1.bf16.msra.mxu0 %v3158_v18  ;;  %v191_v33 = vld [vmem:[#allocation2 + $0x10] sm:$0xff]  ;;  %v194_v34 = vld [vmem:[#allocation2 + $0x28] sm:$0xff]  ;;  %v248_v38 = vld [vmem:[#allocation2 + $0x1d8] sm:$0xff]  ;;  %v3187_v41 = vpack.c.bf16 %v210_v29, %v207_v28  ;;  %v3190_v44 = vpack.c.bf16 %v217_v35, %v214_v31 }
  0x36   : > { %2523 = vmatprep.subr.bf16.mxu0 %v3160_v19  ;;  %v3180_v36 = vpack.c.bf16 %v194_v34, %v191_v33  ;;  %v3184_v39 = vpack.c.bf16 %v248_v38, %v245_v37  ;;  %v197_v40 = vld [vmem:[#allocation2 + $0x40] sm:$0xff]  ;;  %2611 = vmatprep.subr.bf16.mxu1 %v3176_v32  ;;  %v200_v43 = vld [vmem:[#allocation2 + $0x58] sm:$0xff]  ;;  %v251_v47 = vld [vmem:[#allocation2 + $0x1f0] sm:$0xff] }
  0x37   : > { %2989 = vset.pattern.permute.xlu1 %v3054_v13  ;;  %2990 = vset.pattern.permute.xlu0 %v3052_v0  ;;  %4189 = vst [vmem:[#allocation11_spill] sm:$0xff] %v3187_v41  ;;  %v213_v42 = vld [vmem:[#allocation2 + $0xc0] sm:$0xff]  ;;  %4190 = vst [vmem:[#allocation12_spill] sm:$0xff] %v3190_v44  ;;  %v216_v45 = vld [vmem:[#allocation2 + $0xd8] sm:$0xff]  ;;  %v3193_v46 = vpack.c.bf16 %v200_v43, %v197_v40 }
  0x38   : > { %395 = vperm.xlu1 %2989, %v3146_v9   ;;  %453 = vperm.xlu0 %2990, %v3146_v9   ;;  %v254_v48 = vld [vmem:[#allocation2 + $0x208] sm:$0xff]  ;;  %v3198_v49 = vld [vmem:[%s4102_s2 + $0x18] sm:$0xff]  ;;  %v223_v51 = vld [vmem:[#allocation2 + $0x110] sm:$0xff]  ;;  %v3206_v55 = vpack.c.bf16 %v216_v45, %v213_v42 }
  0x39   : > { %2525 = vmatpush1.bf16.msra.mxu0 %v3171_v25  ;;  %2613 = vmatpush3.bf16.msra.mxu1 %v3180_v36  ;;  %v220_v50 = vld [vmem:[#allocation2 + $0xf8] sm:$0xff]  ;;  %v3201_v52 = vpack.c.bf16 %v254_v48, %v251_v47  ;;  %v203_v53 = vld [vmem:[#allocation2 + $0x70] sm:$0xff]  ;;  %v206_v54 = vld [vmem:[#allocation2 + $0x88] sm:$0xff] }
  0x3a   : > { %2527 = vmatprep.subr.bf16.mxu0 %v3174_v27  ;;  %2615 = vmatprep.subr.bf16.mxu1 %v3184_v39  ;;  %4191 = vst [vmem:[#allocation13_spill] sm:$0xff] %v3206_v55  ;;  %v257_v56 = vld [vmem:[#allocation2 + $0x220] sm:$0xff]  ;;  %v260_v57 = vld [vmem:[#allocation2 + $0x238] sm:$0xff]  ;;  %v3209_v58 = vpack.c.bf16 %v223_v51, %v220_v50  ;;  %v219_v59 = vld [vmem:[#allocation2 + $0xf0] sm:$0xff]  ;;  %v3213_v63 = vpack.c.bf16 %v206_v54, %v203_v53 }
  0x3b   : > { %v222_v60 = vld [vmem:[#allocation2 + $0x108] sm:$0xff]  ;;  %v229_v62 = vld [vmem:[#allocation2 + $0x140] sm:$0xff]  ;;  %v3215_v3 = vpack.c.bf16 %v260_v57, %v257_v56  ;;  %v212_v6 = vld [vmem:[#allocation2 + $0xb8] sm:$0xff] }
  0x3c   : > { %2991 = vset.pattern.permute.xlu1 %v3053_v1  ;;  %457 = vperm.xlu0 %2990, %v3168_v24   ;;  %4192 = vst [vmem:[#allocation14_spill] sm:$0xff] %v3209_v58  ;;  %v226_v61 = vld [vmem:[#allocation2 + $0x128] sm:$0xff]  ;;  %v209_v4 = vld [vmem:[#allocation2 + $0xa0] sm:$0xff]  ;;  %v3219_v7 = vpack.c.bf16 %v222_v60, %v219_v59  ;;  %v263_v8 = vld [vmem:[#allocation2 + $0x250] sm:$0xff] }
  0x3d   : > { %352 = vperm.xlu1 %2991, %v3168_v24   ;;  %2529 = vmatpush1.bf16.msra.mxu0 %v3187_v41  ;;  %v266_v11 = vld [vmem:[#allocation2 + $0x268] sm:$0xff]  ;;  %v225_v14 = vld [vmem:[#allocation2 + $0x120] sm:$0xff]  ;;  %v228_v15 = vld [vmem:[#allocation2 + $0x138] sm:$0xff]  ;;  %v3226_v20 = vpack.c.bf16 %v212_v6, %v209_v4 }
  0x3e   : > { %2531 = vmatprep.subr.bf16.mxu0 %v3190_v44  ;;  %2617 = vmatpush3.bf16.msra.mxu1 %v3193_v46  ;;  %4193 = vst [vmem:[#allocation15_spill] sm:$0xff] %v3219_v7  ;;  %v232_v16 = vld [vmem:[#allocation2 + $0x158] sm:$0xff]  ;;  %v235_v17 = vld [vmem:[#allocation2 + $0x170] sm:$0xff]  ;;  %v218_v22 = vld [vmem:[#allocation2 + $0xe8] sm:$0xff]  ;;  %v3232_v23 = vpack.c.bf16 %v228_v15, %v225_v14 }
  0x3f   : > { %2619 = vmatprep.subr.bf16.mxu1 %v3201_v52  ;;  %v215_v21 = vld [vmem:[#allocation2 + $0xd0] sm:$0xff]  ;;  %v269_v26 = vld [vmem:[#allocation2 + $0x280] sm:$0xff]  ;;  %v272_v28 = vld [vmem:[#allocation2 + $0x298] sm:$0xff]  ;;  %v3236_v29 = vpack.c.bf16 %v235_v17, %v232_v16 }
  0x40   : > { %2994 = vset.pattern.permute.xlu0 %v3054_v13  ;;  %4195 = vst [vmem:[#allocation17_spill] sm:$0xff] %v3232_v23  ;;  %v231_v30 = vld [vmem:[#allocation2 + $0x150] sm:$0xff]  ;;  %v234_v31 = vld [vmem:[#allocation2 + $0x168] sm:$0xff]  ;;  %v241_v34 = vld [vmem:[#allocation2 + $0x1a0] sm:$0xff]  ;;  %v3240_v35 = vpack.c.bf16 %v218_v22, %v215_v21  ;;  %v3243_v37 = vpack.c.bf16 %v272_v28, %v269_v26 }
  0x41   : > { %2992 = vset.pattern.permute.xlu1 %v3054_v13  ;;  %403 = vperm.xlu0 %2994, %v3198_v49   ;;  %v3223_v13 = vpack.c.bf16 %v229_v62, %v226_v61  ;;  %4196 = vst [vmem:[#allocation18_spill] sm:$0xff] %v3236_v29  ;;  %v238_v33 = vld [vmem:[#allocation2 + $0x188] sm:$0xff]  ;;  %v221_v38 = vld [vmem:[#allocation2 + $0x100] sm:$0xff]  ;;  %v3246_v40 = vpack.c.bf16 %v234_v31, %v231_v30  ;;  %v275_v42 = vld [vmem:[#allocation2 + $0x2b0] sm:$0xff] }
  0x42   : > { %399 = vperm.xlu1 %2992, %v3168_v24   ;;  %2533 = vmatpush1.bf16.msra.mxu0 %v3206_v55  ;;  %v278_v43 = vld [vmem:[#allocation2 + $0x2c8] sm:$0xff]  ;;  %v3249_v45 = vpack.c.bf16 %v241_v34, %v238_v33  ;;  %v237_v47 = vld [vmem:[#allocation2 + $0x180] sm:$0xff]  ;;  %v240_v48 = vld [vmem:[#allocation2 + $0x198] sm:$0xff] }
  0x43   : > { %2535 = vmatprep.subr.bf16.mxu0 %v3209_v58  ;;  %4194 = vst [vmem:[#allocation16_spill] sm:$0xff] %v3223_v13  ;;  %2621 = vmatpush3.bf16.msra.mxu1 %v3213_v63  ;;  %4197 = vst [vmem:[#allocation19_spill] sm:$0xff] %v3246_v40  ;;  %v244_v50 = vld [vmem:[#allocation2 + $0x1b8] sm:$0xff]  ;;  %v247_v51 = vld [vmem:[#allocation2 + $0x1d0] sm:$0xff]  ;;  %v3255_v54 = vpack.c.bf16 %v278_v43, %v275_v42  ;;  %v3258_v59 = vpack.c.bf16 %v240_v48, %v237_v47 }
  0x44   : > { %2623 = vmatprep.subr.bf16.mxu1 %v3215_v3  ;;  %4198 = vst [vmem:[#allocation20_spill] sm:$0xff] %v3249_v45  ;;  %v227_v56 = vld [vmem:[#allocation2 + $0x130] sm:$0xff]  ;;  %v230_v57 = vld [vmem:[#allocation2 + $0x148] sm:$0xff]  ;;  %v281_v60 = vld [vmem:[#allocation2 + $0x2e0] sm:$0xff]  ;;  %v3261_v62 = vpack.c.bf16 %v247_v51, %v244_v50 }
  0x45   : > { %4199 = vst [vmem:[#allocation21_spill] sm:$0xff] %v3258_v59  ;;  %v284_v61 = vld [vmem:[#allocation2 + $0x2f8] sm:$0xff]  ;;  %v243_v4 = vld [vmem:[#allocation2 + $0x1b0] sm:$0xff]  ;;  %v246_v6 = vld [vmem:[#allocation2 + $0x1c8] sm:$0xff]  ;;  %v3264_v14 = vpack.c.bf16 %v230_v57, %v227_v56 }
  0x46   : > { %2993 = vset.pattern.permute.xlu1 %v3053_v1  ;;  %v3229_v1 = vpack.c.bf16 %v266_v11, %v263_v8  ;;  %2537 = vmatpush1.bf16.msra.mxu0 %v3219_v7  ;;  %4200 = vst [vmem:[#allocation22_spill] sm:$0xff] %v3261_v62  ;;  %v250_v8 = vld [vmem:[#allocation2 + $0x1e8] sm:$0xff]  ;;  %v253_v11 = vld [vmem:[#allocation2 + $0x200] sm:$0xff]  ;;  %v3267_v15 = vpack.c.bf16 %v284_v61, %v281_v60  ;;  %v236_v17 = vld [vmem:[#allocation2 + $0x178] sm:$0xff] }
  0x47   : > { %357 = vperm.xlu1 %2993, %v3198_v49   ;;  %2539 = vmatprep.subr.bf16.mxu0 %v3223_v13  ;;  %v233_v16 = vld [vmem:[#allocation2 + $0x160] sm:$0xff]  ;;  %v3270_v21 = vpack.c.bf16 %v246_v6, %v243_v4  ;;  %v287_v22 = vld [vmem:[#allocation2 + $0x310] sm:$0xff]  ;;  %v290_v26 = vld [vmem:[#allocation2 + $0x328] sm:$0xff]  ;;  %v3273_v28 = vpack.c.bf16 %v253_v11, %v250_v8 }
  0x48   : > { %2625 = vmatpush3.bf16.msra.mxu1 %v3226_v20  ;;  %v249_v30 = vld [vmem:[#allocation2 + $0x1e0] sm:$0xff]  ;;  %v252_v31 = vld [vmem:[#allocation2 + $0x1f8] sm:$0xff]  ;;  %v259_v34 = vld [vmem:[#allocation2 + $0x230] sm:$0xff] }
  0x49   : > { %2627 = vmatprep.subr.bf16.mxu1 %v3229_v1  ;;  %4201 = vst [vmem:[#allocation23_spill] sm:$0xff] %v3270_v21  ;;  %4202 = vst [vmem:[#allocation24_spill] sm:$0xff] %v3273_v28  ;;  %v256_v33 = vld [vmem:[#allocation2 + $0x218] sm:$0xff]  ;;  %v3282_v42 = vpack.c.bf16 %v252_v31, %v249_v30  ;;  %v255_v47 = vld [vmem:[#allocation2 + $0x210] sm:$0xff] }
  0x4a   : > { %2541 = vmatpush1.bf16.msra.mxu0 %v3232_v23  ;;  %v3285_v43 = vpack.c.bf16 %v259_v34, %v256_v33  ;;  %v258_v48 = vld [vmem:[#allocation2 + $0x228] sm:$0xff]  ;;  %v265_v51 = vld [vmem:[#allocation2 + $0x260] sm:$0xff]  ;;  %v264_v61 = vld [vmem:[#allocation2 + $0x258] sm:$0xff] }
  0x4b   : > { %2995 = vset.pattern.permute.xlu1 %v3052_v0  ;;  %v224_v0 = vld [vmem:[#allocation2 + $0x118] sm:$0xff]  ;;  %2543 = vmatprep.subr.bf16.mxu0 %v3236_v29  ;;  %4203 = vst [vmem:[#allocation25_spill] sm:$0xff] %v3282_v42  ;;  %v262_v50 = vld [vmem:[#allocation2 + $0x248] sm:$0xff]  ;;  %v3290_v56 = vpack.c.bf16 %v258_v48, %v255_v47  ;;  %v261_v60 = vld [vmem:[#allocation2 + $0x240] sm:$0xff]  ;;  %v3055_v47 = vmov 35  }
  0x4c   : > { %461 = vperm.xlu1 %2995, %v3198_v49   ;;  %2629 = vmatpush3.bf16.msra.mxu1 %v3240_v35  ;;  %v3252_v53 = vpack.c.bf16 %v224_v0, %v221_v38  ;;  %v3276_v38 = vpack.c.bf16 %v236_v17, %v233_v16  ;;  %v3279_v0 = vpack.c.bf16 %v290_v26, %v287_v22  ;;  %v268_v4 = vld [vmem:[#allocation2 + $0x278] sm:$0xff]  ;;  %v271_v6 = vld [vmem:[#allocation2 + $0x290] sm:$0xff]  ;;  %v270_v17 = vld [vmem:[#allocation2 + $0x288] sm:$0xff] }
  0x4d   : > { %2631 = vmatprep.subr.bf16.mxu1 %v3243_v37  ;;  %4204 = vst [vmem:[#allocation26_spill] sm:$0xff] %v3285_v43  ;;  %4205 = vst [vmem:[#allocation27_spill] sm:$0xff] %v3290_v56  ;;  %v3293_v57 = vpack.c.bf16 %v265_v51, %v262_v50  ;;  %v3296_v8 = vpack.c.bf16 %v264_v61, %v261_v60  ;;  %v3299_v11 = vpack.c.bf16 %v271_v6, %v268_v4  ;;  %v267_v16 = vld [vmem:[#allocation2 + $0x270] sm:$0xff]  ;;  %v274_v22 = vld [vmem:[#allocation2 + $0x2a8] sm:$0xff] }
  0x4e   : > { %2545 = vmatpush1.bf16.msra.mxu0 %v3246_v40  ;;  %v277_v26 = vld [vmem:[#allocation2 + $0x2c0] sm:$0xff]  ;;  %v3302_v30 = vpack.c.bf16 %v270_v17, %v267_v16  ;;  %v276_v34 = vld [vmem:[#allocation2 + $0x2b8] sm:$0xff]  ;;  %v283_v50 = vld [vmem:[#allocation2 + $0x2f0] sm:$0xff]  ;;  %2997 = vset.pattern.permute.xlu0 %v3055_v47  ;;  %v4107_v17 = vlaneseq }
  0x4f   : > { %2547 = vmatprep.subr.bf16.mxu0 %v3249_v45  ;;  %4206 = vst [vmem:[#allocation28_spill] sm:$0xff] %v3293_v57  ;;  %4207 = vst [vmem:[#allocation29_spill] sm:$0xff] %v3296_v8  ;;  %v3305_v31 = vpack.c.bf16 %v277_v26, %v274_v22  ;;  %v273_v33 = vld [vmem:[#allocation2 + $0x2a0] sm:$0xff]  ;;  %v280_v48 = vld [vmem:[#allocation2 + $0x2d8] sm:$0xff]  ;;  %509 = vperm.xlu0 %2997, %v3146_v9  }
  0x50   : > { %2633 = vmatpush3.bf16.msra.mxu1 %v3252_v53  ;;  %4208 = vst [vmem:[#allocation30_spill] sm:$0xff] %v3299_v11  ;;  %4209 = vst [vmem:[#allocation31_spill] sm:$0xff] %v3302_v30  ;;  %2996 = vset.pattern.permute.xlu1 %v3055_v47  ;;  %v3310_v51 = vpack.c.bf16 %v276_v34, %v273_v33  ;;  %v3313_v60 = vpack.c.bf16 %v283_v50, %v280_v48  ;;  %v279_v61 = vld [vmem:[#allocation2 + $0x2d0] sm:$0xff]  ;;  %v282_v4 = vld [vmem:[#allocation2 + $0x2e8] sm:$0xff]  ;;  %v3331_v22 = vshrl.u32 %v4107_v17, 7 }
  0x51   : > { %2635 = vmatprep.subr.bf16.mxu1 %v3255_v54  ;;  %4210 = vst [vmem:[#allocation32_spill] sm:$0xff] %v3305_v31  ;;  %505 = vperm.xlu1 %2996, %v3137_v2   ;;  %v286_v6 = vld [vmem:[#allocation2 + $0x308] sm:$0xff]  ;;  %v289_v16 = vld [vmem:[#allocation2 + $0x320] sm:$0xff]  ;;  %v3317_v2 = vpack.c.bf16 %v282_v4, %v279_v61  ;;  %v291_v44 = vld [vmem:[#allocation2 + $0x330] sm:$0xff] }
  0x52   : > { %2549 = vmatpush1.bf16.msra.mxu0 %v3258_v59  ;;  %4211 = vst [vmem:[#allocation33_spill] sm:$0xff] %v3310_v51  ;;  %4212 = vst [vmem:[#allocation34_spill] sm:$0xff] %v3313_v60  ;;  %v3320_v9 = vpack.c.bf16 %v289_v16, %v286_v6  ;;  %v3339_v26 = vsub.s32 0, %v3331_v22  ;;  %v3342_v33 = vsub.s32 1, %v3331_v22  ;;  %v296_v59 = vld [vmem:[#allocation2 + $0x358] sm:$0xff]  ;;  %v309_v19 = vld [vmem:[#allocation2 + $0x3c0] sm:$0xff] }
  0x53   : > { %2551 = vmatprep.subr.bf16.mxu0 %v3261_v62  ;;  %4213 = vst [vmem:[#allocation35_spill] sm:$0xff] %v3317_v2  ;;  %4215 = vst [vmem:[#allocation37_spill] sm:$0xff] %v3331_v22  ;;  %v3345_v34 = vld [vmem:[%s3336_s18] ss:$4 sm:$0x7]  ;;  %v308_v25 = vld [vmem:[#allocation2 + $0x3b8] sm:$0xff] }
  0x54   : > { %2637 = vmatpush3.bf16.msra.mxu1 %v3264_v14  ;;  %4214 = vst [vmem:[#allocation36_spill] sm:$0xff] %v3320_v9  ;;  %4216 = vst [vmem:[#allocation38_spill] sm:$0xff] %v3339_v26  ;;  %v3348_v47 = vld [vmem:[%s3336_s18 + $0x1] ss:$4 sm:$0x7]  ;;  %v3359_v4 = vrot.slane %v3345_v34, %v3339_v26  ;;  %v3363_v6 = vrot.slane %v3345_v34, %v3342_v33  ;;  %v312_v18 = vld [vmem:[#allocation2 + $0x3d8] sm:$0xff] }
  0x55   : > { %2639 = vmatprep.subr.bf16.mxu1 %v3267_v15  ;;  %513 = vperm.xlu1 %2996, %v3168_v24   ;;  %4217 = vst [vmem:[#allocation39_spill] sm:$0xff] %v3342_v33  ;;  %v3355_v61 = vld [vmem:[%s3336_s18 + $0x2] ss:$4 sm:$0x7]  ;;  %v3367_v16 = vrot.slane %v3348_v47, %v3339_v26  ;;  %v3371_v17 = vrot.slane %v3348_v47, %v3342_v33  ;;  %v316_v12 = vld [vmem:[#allocation2 + $0x3f8] sm:$0xff] }
  0x56   : > { %2553 = vmatpush1.bf16.msra.mxu0 %v3270_v21  ;;  %v293_v62 = vld [vmem:[#allocation2 + $0x340] sm:$0xff]  ;;  %v320_v10 = vld [vmem:[#allocation2 + $0x418] sm:$0xff] }
  0x57   : > { %2555 = vmatprep.subr.bf16.mxu0 %v3273_v28  ;;  %v3415_v55 = vpack.c.bf16 %v296_v59, %v293_v62  ;;  %v297_v62 = vld [vmem:[#allocation2 + $0x360] sm:$0xff] }
  0x58   : > { %2641 = vmatpush3.bf16.msra.mxu1 %v3276_v38 }
  0x59   : > { %2643 = vmatprep.subr.bf16.mxu1 %v3279_v0  ;;  %517 = vperm.xlu1 %2996, %v3198_v49   ;;  %4220 = vst [vmem:[#allocation42_spill] sm:$0xff] %v3415_v55 }
  0x5a   : > { %2557 = vmatpush1.bf16.msra.mxu0 %v3282_v42 }
  0x5b   : > { %2559 = vmatprep.subr.bf16.mxu0 %v3285_v43 }
  0x5e   : > { %2561 = vmatpush1.bf16.msra.mxu0 %v3290_v56  ;;  %v295_v56 = vld [vmem:[#allocation2 + $0x350] sm:$0xff] }
  0x5f   : > { %2563 = vmatprep.subr.bf16.mxu0 %v3293_v57  ;;  %v288_v57 = vld [vmem:[#allocation2 + $0x318] sm:$0xff] }
  0x62   : > { %2565 = vmatpush1.bf16.msra.mxu0 %v3296_v8  ;;  %v285_v8 = vld [vmem:[#allocation2 + $0x300] sm:$0xff] }
  0x63   : > { %2567 = vmatprep.subr.bf16.mxu0 %v3299_v11  ;;  %v3405_v58 = vpack.c.bf16 %v288_v57, %v285_v8  ;;  %v301_v57 = vld [vmem:[#allocation2 + $0x380] sm:$0xff]  ;;  %v299_v8 = vld [vmem:[#allocation2 + $0x370] sm:$0xff] }
  0x65   : > { %4218 = vst [vmem:[#allocation40_spill] sm:$0xff] %v3405_v58 }
  0x66   : > { %2569 = vmatpush1.bf16.msra.mxu0 %v3302_v30 }
  0x67   : > { %2571 = vmatprep.subr.bf16.mxu0 %v3305_v31 }
  0x6a   : > { %2573 = vmatpush1.bf16.msra.mxu0 %v3310_v51 }
  0x6b   : > { %2575 = vmatprep.subr.bf16.mxu0 %v3313_v60 }
  0x6e   : > { %2577 = vmatpush1.bf16.msra.mxu0 %v3317_v2  ;;  %v3379_v2 = vrot.slane %v3355_v61, %v3342_v33  ;;  %v292_v33 = vld [vmem:[#allocation2 + $0x338] sm:$0xff] }
  0x6f   : > { %2579 = vmatprep.subr.bf16.mxu0 %v3320_v9  ;;  %v3375_v9 = vrot.slane %v3355_v61, %v3339_v26 }
  0xad   : > { %v3350_v48 = vpop.permute.xlu0 %342  ;;  %v3352_v50 = vpop.permute.xlu1 %449 }
  0xae   : > { %v376_v31 = vmul.f32 %v3359_v4, %v3350_v48  ;;  %v377_v30 = vmul.f32 %v3363_v6, %v3350_v48  ;;  %v480_v43 = vmul.f32 %v3375_v9, %v3352_v50  ;;  %v481_v21 = vmul.f32 %v3379_v2, %v3352_v50 }
  0xb2   : > { %v3381_v60 = vpop.permute.xlu0 %391  ;;  %v3383_v51 = vpop.permute.xlu1 %347 }
  0xb3   : > { %v422_v11 = vmul.f32 %v3367_v16, %v3381_v60  ;;  %v423_v26 = vmul.f32 %v3371_v17, %v3381_v60  ;;  %v379_v45 = vmul.f32 %v3359_v4, %v3383_v51  ;;  %v380_v40 = vmul.f32 %v3363_v6, %v3383_v51 }
  0xb5   : > { %v434_v42 = vadd.f32 %v422_v11, %v376_v31  ;;  %v435_v28 = vadd.f32 %v423_v26, %v377_v30  ;;  %v3407_v11 = vpack.c.bf16 %v295_v56, %v292_v33  ;;  %v302_v33 = vld [vmem:[#allocation2 + $0x388] sm:$0xff] }
  0xb6   : > { %v3429_v27 = vpack.c.bf16 %v302_v33, %v299_v8  ;;  %v310_v33 = vld [vmem:[#allocation2 + $0x3c8] sm:$0xff] }
  0xb7   : > { %v3401_v29 = vpop.permute.xlu1 %395  ;;  %v493_v23 = vadd.f32 %v481_v21, %v435_v28  ;;  %v3403_v13 = vpop.permute.xlu0 %453  ;;  %v492_v7 = vadd.f32 %v480_v43, %v434_v42  ;;  %4219 = vst [vmem:[#allocation41_spill] sm:$0xff] %v3407_v11  ;;  %v294_v21 = vld [vmem:[#allocation2 + $0x348] sm:$0xff] }
  0xb8   : > { %v425_v30 = vmul.f32 %v3367_v16, %v3401_v29  ;;  %v426_v31 = vmul.f32 %v3371_v17, %v3401_v29  ;;  %v483_v26 = vmul.f32 %v3375_v9, %v3403_v13  ;;  %v484_v28 = vmul.f32 %v3379_v2, %v3403_v13  ;;  %v298_v42 = vld [vmem:[#allocation2 + $0x368] sm:$0xff]  ;;  %4223 = vst [vmem:[#allocation45_spill] sm:$0xff] %v3429_v27 }
  0xb9   : > { %584 = vmatprep.mubr.f32.mxu0 %v493_v23  ;;  %762 = vmatprep.mubr.f32.mxu1 %v493_v23  ;;  %v3421_v59 = vpack.c.bf16 %v294_v21, %v291_v44 }
  0xba   : > { %v437_v43 = vadd.f32 %v425_v30, %v379_v45  ;;  %v438_v56 = vadd.f32 %v426_v31, %v380_v40  ;;  %585 = vmatmul.mubr.f32.vlgmr.msra.gmra.mrb[0].mxu0 %v492_v7  ;;  %763 = vmatmul.mubr.f32.vlgmr.msra.gmra.mrb[0].mxu1 %v492_v7  ;;  %v300_v45 = vld [vmem:[#allocation2 + $0x378] sm:$0xff]  ;;  %v307_v30 = vld [vmem:[#allocation2 + $0x3b0] sm:$0xff]  ;;  %v3427_v31 = vpack.c.bf16 %v301_v57, %v298_v42  ;;  %v306_v57 = vld [vmem:[#allocation2 + $0x3a8] sm:$0xff] }
  0xbb   : > { %2581 = vmatpush1.bf16.msra.mxu0 %v3405_v58  ;;  %2645 = vmatpush3.bf16.msra.mxu1 %v3279_v0  ;;  %4221 = vst [vmem:[#allocation43_spill] sm:$0xff] %v3421_v59  ;;  %v304_v7 = vld [vmem:[#allocation2 + $0x398] sm:$0xff]  ;;  %v305_v58 = vld [vmem:[#allocation2 + $0x3a0] sm:$0xff]  ;;  %v3433_v44 = vpack.c.bf16 %v300_v45, %v297_v62  ;;  %v3435_v21 = vpop.permute.xlu0 %457  ;;  %v311_v45 = vld [vmem:[#allocation2 + $0x3d0] sm:$0xff] }
  0xbc   : > { %v3423_v41 = vpop.permute.xlu1 %352  ;;  %2583 = vmatprep.subr.bf16.mxu0 %v3407_v11  ;;  %2647 = vmatprep.subr.bf16.mxu1 %v3415_v55  ;;  %v496_v23 = vadd.f32 %v484_v28, %v438_v56  ;;  %v495_v40 = vadd.f32 %v483_v26, %v437_v43  ;;  %4222 = vst [vmem:[#allocation44_spill] sm:$0xff] %v3427_v31  ;;  %v303_v56 = vld [vmem:[#allocation2 + $0x390] sm:$0xff] }
  0xbd   : > { %4224 = vst [vmem:[#allocation46_spill] sm:$0xff] %v3433_v44  ;;  %v3437_v26 = vpack.c.bf16 %v307_v30, %v304_v7  ;;  %v382_v28 = vmul.f32 %v3359_v4, %v3423_v41  ;;  %v383_v42 = vmul.f32 %v3363_v6, %v3423_v41  ;;  %v3443_v43 = vpack.c.bf16 %v308_v25, %v305_v58  ;;  %v313_v58 = vld [vmem:[#allocation2 + $0x3e0] sm:$0xff]  ;;  %v314_v7 = vld [vmem:[#allocation2 + $0x3e8] sm:$0xff] }
  0xbe   : > { %590 = vmatprep.mubr.f32.mxu0 %v496_v23  ;;  %767 = vmatprep.mubr.f32.mxu1 %v496_v23  ;;  %v487_v25 = vmul.f32 %v3379_v2, %v3435_v21  ;;  %v3458_v30 = vsub.s32 2, %v3331_v22 }
  0xbf   : > { %2585 = vmatpush1.bf16.msra.mxu0 %v3421_v59  ;;  %2649 = vmatpush3.bf16.msra.mxu1 %v3415_v55  ;;  %4225 = vst [vmem:[#allocation47_spill] sm:$0xff] %v3437_v26 }
  0xc0   : > { %591 = vmatmul.mubr.f32.gmra.mrb[2].mxu0 %v495_v40  ;;  %768 = vmatmul.mubr.f32.gmra.mrb[2].mxu1 %v495_v40  ;;  %v486_v40 = vmul.f32 %v3375_v9, %v3435_v21  ;;  %4226 = vst [vmem:[#allocation48_spill] sm:$0xff] %v3458_v30  ;;  %v3464_v59 = vpop.permute.xlu0 %403  ;;  %v3470_v22 = vrot.slane %v3348_v47, %v3458_v30 }
  0xc1   : > { %v3445_v8 = vpop.permute.xlu1 %399  ;;  %2587 = vmatprep.subr.bf16.mxu0 %v3427_v31  ;;  %2651 = vmatprep.subr.bf16.mxu1 %v3429_v27  ;;  %v3462_v31 = vpack.c.bf16 %v306_v57, %v303_v56  ;;  %v319_v56 = vld [vmem:[#allocation2 + $0x410] sm:$0xff]  ;;  %v317_v57 = vld [vmem:[#allocation2 + $0x400] sm:$0xff] }
  0xc2   : > { %v428_v62 = vmul.f32 %v3367_v16, %v3445_v8  ;;  %v429_v23 = vmul.f32 %v3371_v17, %v3445_v8 }
  0xc3   : > { %2589 = vmatpush1.bf16.msra.mxu0 %v3433_v44  ;;  %2653 = vmatpush3.bf16.msra.mxu1 %v3429_v27  ;;  %v3472_v44 = vpack.c.bf16 %v313_v58, %v310_v33  ;;  %v3474_v27 = vpack.c.bf16 %v314_v7, %v311_v45  ;;  %v3488_v58 = vpack.c.bf16 %v312_v18, %v309_v19  ;;  %v323_v45 = vld [vmem:[#allocation2 + $0x430] sm:$0xff]  ;;  %v326_v7 = vld [vmem:[#allocation2 + $0x448] sm:$0xff] }
  0xc4   : > { %v440_v55 = vadd.f32 %v428_v62, %v382_v28  ;;  %v441_v11 = vadd.f32 %v429_v23, %v383_v42  ;;  %2591 = vmatprep.subr.bf16.mxu0 %v3437_v26  ;;  %2655 = vmatprep.subr.bf16.mxu1 %v3443_v43  ;;  %v431_v62 = vmul.f32 %v3367_v16, %v3464_v59  ;;  %v315_v16 = vld [vmem:[#allocation2 + $0x3f0] sm:$0xff] }
  0xc5   : > { %v432_v23 = vmul.f32 %v3371_v17, %v3464_v59  ;;  %v3494_v17 = vpack.c.bf16 %v319_v56, %v316_v12  ;;  %v476_v12 = vrot.slane %v3355_v61, %v3458_v30  ;;  %v324_v61 = vld [vmem:[#allocation2 + $0x438] sm:$0xff] }
  0xc6   : > { %v3476_v28 = vpop.permute.xlu1 %357  ;;  %v499_v42 = vadd.f32 %v487_v25, %v441_v11  ;;  %v498_v26 = vadd.f32 %v486_v40, %v440_v55  ;;  %v3492_v11 = vrot.slane %v3345_v34, %v3458_v30  ;;  %v3496_v55 = vpack.c.bf16 %v320_v10, %v317_v57  ;;  %v318_v40 = vld [vmem:[#allocation2 + $0x408] sm:$0xff]  ;;  %v329_v30 = vld [vmem:[#allocation2 + $0x460] sm:$0xff] }
  0xc7   : > { %2593 = vmatpush1.bf16.msra.mxu0 %v3462_v31  ;;  %2657 = vmatpush3.bf16.msra.mxu1 %v3443_v43  ;;  %v385_v47 = vmul.f32 %v3359_v4, %v3476_v28  ;;  %v386_v33 = vmul.f32 %v3363_v6, %v3476_v28  ;;  %4227 = vst [vmem:[#allocation49_spill] sm:$0xff] %v3494_v17  ;;  %v322_v34 = vld [vmem:[#allocation2 + $0x428] sm:$0xff]  ;;  %v325_v6 = vld [vmem:[#allocation2 + $0x440] sm:$0xff] }
  0xc8   : > { %596 = vmatprep.mubr.f32.mxu0 %v499_v42  ;;  %772 = vmatprep.mubr.f32.mxu1 %v499_v42  ;;  %v424_v4 = vmul.f32 %v3470_v22, %v3381_v60  ;;  %v3506_v25 = vpack.c.bf16 %v318_v40, %v315_v16  ;;  %v321_v60 = vld [vmem:[#allocation2 + $0x420] sm:$0xff]  ;;  %v328_v42 = vld [vmem:[#allocation2 + $0x458] sm:$0xff]  ;;  %v3516_v40 = vpack.c.bf16 %v326_v7, %v323_v45 }
  0xc9   : > { %597 = vmatmul.mubr.f32.gmra.mrb[4].mxu0 %v498_v26  ;;  %2595 = vmatprep.subr.bf16.mxu0 %v3472_v44  ;;  %v443_v18 = vadd.f32 %v431_v62, %v385_v47  ;;  %v444_v19 = vadd.f32 %v432_v23, %v386_v33  ;;  %v331_v62 = vld [vmem:[#allocation2 + $0x470] sm:$0xff]  ;;  %v3514_v23 = vpack.c.bf16 %v325_v6, %v322_v34 }
  0xca   : > { %773 = vmatmul.mubr.f32.gmra.mrb[4].mxu1 %v498_v26  ;;  %2659 = vmatprep.subr.bf16.mxu1 %v3474_v27  ;;  %v378_v26 = vmul.f32 %v3492_v11, %v3350_v48  ;;  %v332_v48 = vld [vmem:[#allocation2 + $0x478] sm:$0xff]  ;;  %v381_v34 = vmul.f32 %v3492_v11, %v3383_v51  ;;  %v384_v6 = vmul.f32 %v3492_v11, %v3423_v41 }
  0xcb   : > { %2597 = vmatpush1.bf16.msra.mxu0 %v3488_v58  ;;  %2661 = vmatpush3.bf16.msra.mxu1 %v3474_v27  ;;  %v462_v10 = vpop.permute.xlu1 %461  ;;  %v430_v45 = vmul.f32 %v3470_v22, %v3445_v8  ;;  %v387_v8 = vmul.f32 %v3492_v11, %v3476_v28 }
  0xcc   : > { %v489_v56 = vmul.f32 %v3375_v9, %v462_v10  ;;  %v490_v57 = vmul.f32 %v3379_v2, %v462_v10  ;;  %2599 = vmatprep.subr.bf16.mxu0 %v3494_v17  ;;  %2663 = vmatprep.subr.bf16.mxu1 %v3496_v55  ;;  %v436_v47 = vadd.f32 %v424_v4, %v378_v26 }
  0xcd   : > { %v3520_v2 = vpack.c.bf16 %v324_v61, %v321_v60  ;;  %v3522_v9 = vpack.c.bf16 %v331_v62, %v328_v42  ;;  %v482_v17 = vmul.f32 %v476_v12, %v3352_v50  ;;  %v427_v4 = vmul.f32 %v3470_v22, %v3401_v29 }
  0xce   : > { %v502_v33 = vadd.f32 %v490_v57, %v444_v19  ;;  %v501_v16 = vadd.f32 %v489_v56, %v443_v18  ;;  %v327_v18 = vld [vmem:[#allocation2 + $0x450] sm:$0xff]  ;;  %v330_v19 = vld [vmem:[#allocation2 + $0x468] sm:$0xff]  ;;  %v3534_v50 = vpack.c.bf16 %v332_v48, %v329_v30  ;;  %v485_v29 = vmul.f32 %v476_v12, %v3403_v13 }
  0xcf   : > { %2601 = vmatpush1.bf16.msra.mxu0 %v3506_v25  ;;  %2665 = vmatpush3.bf16.msra.mxu1 %v3496_v55  ;;  %v494_v51 = vadd.f32 %v482_v17, %v436_v47  ;;  %v3540_v7 = vpack.c.bf16 %v330_v19, %v327_v18  ;;  %v439_v41 = vadd.f32 %v427_v4, %v381_v34  ;;  %v3056_v13 = vmov 0.0  }
  0xd0   : > { %602 = vmatprep.mubr.f32.mxu0 %v502_v33  ;;  %777 = vmatprep.mubr.f32.mxu1 %v502_v33  ;;  %v433_v30 = vmul.f32 %v3470_v22, %v3464_v59  ;;  %v442_v60 = vadd.f32 %v430_v45, %v384_v6  ;;  %v488_v17 = vmul.f32 %v476_v12, %v3435_v21  ;;  %v510_v21 = vpop.permute.xlu0 %509 }
  0xd1   : > { %603 = vmatmul.mubr.f32.gmra.mrb[6].mxu0 %v501_v16  ;;  %2603 = vmatprep.subr.bf16.mxu0 %v3514_v23  ;;  %v497_v26 = vadd.f32 %v485_v29, %v439_v41  ;;  %v491_v11 = vmul.f32 %v476_v12, %v462_v10 }
  0xd2   : > { %778 = vmatmul.mubr.f32.gmra.mrb[6].mxu1 %v501_v16  ;;  %2667 = vmatprep.subr.bf16.mxu1 %v3516_v40  ;;  %v445_v28 = vadd.f32 %v433_v30, %v387_v8  ;;  %v500_v22 = vadd.f32 %v488_v17, %v442_v60 }
  0xd3   : > { %2605 = vmatpush1.bf16.msra.mxu0 %v3520_v2  ;;  %2669 = vmatpush3.bf16.msra.mxu1 %v3516_v40 }
  0xd4   : > { %2410 = vmatprep.mubr.f32.mxu1 %v494_v51  ;;  %2607 = vmatprep.subr.bf16.mxu0 %v3522_v9  ;;  %v503_v59 = vadd.f32 %v491_v11, %v445_v28 }
  0xd5   : > { %2671 = vmatprep.subr.bf16.mxu1 %v3534_v50  ;;  %673 = vmatprep.mubr.f32.mxu0 %v3056_v13 }
  0xd7   : > { %2609 = vmatpush1.bf16.msra.mxu0 %v3540_v7  ;;  %2673 = vmatpush3.bf16.msra.mxu1 %v3534_v50 }
  0xd8   : > { %2787 = vmatprep.subr.bf16.mxu0 %v3176_v32 }
  0xda   : > { %674 = vmatmul.mubr.f32.vlgmr.msra.gmra.mrb[0].mxu0 %v494_v51  ;;  %2411 = vmatmul.mubr.f32.vlgmr.msra.gmra.mrb[8].mxu1 %v497_v26 }
  0xdb   : > { %2413 = vmatprep.mubr.f32.mxu1 %v500_v22  ;;  %679 = vmatprep.mubr.f32.mxu0 %v3056_v13 }
  0xdc   : > { %2789 = vmatpush3.bf16.msra.mxu0 %v3180_v36 }
  0xdd   : > { %2791 = vmatprep.subr.bf16.mxu0 %v3184_v39 }
  0xde   : > { %680 = vmatmul.mubr.f32.gmra.mrb[2].mxu0 %v497_v26  ;;  %2414 = vmatmul.mubr.f32.gmra.mrb[10].mxu1 %v503_v59 }
  0xdf   : > { %685 = vmatprep.mubr.f32.mxu0 %v3056_v13  ;;  %953 = vmatprep.mubr.f32.mxu1 %v3056_v13 }
  0xe0   : > { %2793 = vmatpush3.bf16.msra.mxu0 %v3193_v46 }
  0xe1   : > { %2795 = vmatprep.subr.bf16.mxu0 %v3201_v52 }
  0xe2   : > { %686 = vmatmul.mubr.f32.gmra.mrb[4].mxu0 %v500_v22 }
  0xe3   : > { %691 = vmatprep.mubr.f32.mxu0 %v3056_v13 }
  0xe4   : > { %2797 = vmatpush3.bf16.msra.mxu0 %v3213_v63 }
  0xe5   : > { %2799 = vmatprep.subr.bf16.mxu0 %v3215_v3 }
  0xe6   : > { %692 = vmatmul.mubr.f32.gmra.mrb[6].mxu0 %v503_v59 }
  0xe8   : > { %2801 = vmatpush3.bf16.msra.mxu0 %v3226_v20 }
  0xe9   : > { %2803 = vmatprep.subr.bf16.mxu0 %v3229_v1 }
  0xec   : > { %2805 = vmatpush3.bf16.msra.mxu0 %v3240_v35  ;;  %v506_v35 = vpop.permute.xlu1 %505 }
  0xed   : > { %2807 = vmatprep.subr.bf16.mxu0 %v3243_v37 }
  0xf0   : > { %2809 = vmatpush3.bf16.msra.mxu0 %v3252_v53 }
  0xf1   : > { %2811 = vmatprep.subr.bf16.mxu0 %v3255_v54 }
  0xf4   : > { %2813 = vmatpush3.bf16.msra.mxu0 %v3264_v14  ;;  %v514_v14 = vpop.permute.xlu1 %513 }
  0xf5   : > { %2815 = vmatprep.subr.bf16.mxu0 %v3267_v15 }
  0xf8   : > { %2817 = vmatpush3.bf16.msra.mxu0 %v3276_v38  ;;  %v518_v15 = vpop.permute.xlu1 %517 }
  0xf9   : > { %2819 = vmatprep.subr.bf16.mxu0 %v3279_v0 }
 0x18d   : > { %v2217_v32 = vpop.f32.mrb[0].mxu1 }
 0x18e   : > { %v2218_v36 = vpop.f32.mrb[1].mxu1 }
 0x18f   : > { %v2219_v39 = vadd.f32 %v2218_v36, %v2217_v32 }
 0x191   : > { %v765_v56 = vadd.f32 %v2219_v39, %v506_v35 }
 0x193   : > { %v2220_v46 = vpop.f32.mrb[2].mxu1 }
 0x194   : > { %v2221_v52 = vpop.f32.mrb[3].mxu1 }
 0x195   : > { %v2222_v63 = vadd.f32 %v2221_v52, %v2220_v46 }
 0x197   : > { %v770_v12 = vadd.f32 %v2222_v63, %v510_v21 }
 0x19d   : > { %v2223_v3 = vpop.f32.mrb[4].mxu1 }
 0x19e   : > { %v2224_v20 = vpop.f32.mrb[5].mxu1 }
 0x19f   : > { %v2225_v1 = vadd.f32 %v2224_v20, %v2223_v3 }
 0x1a1   : > { %v775_v19 = vadd.f32 %v2225_v1, %v514_v14 }
 0x1a5   : > { %v2226_v37 = vpop.f32.mrb[6].mxu1 }
 0x1a6   : > { %v2227_v53 = vpop.f32.mrb[7].mxu1 }
 0x1a7   : > { %v2228_v54 = vadd.f32 %v2227_v53, %v2226_v37 }
 0x1a9   : > { %v780_v16 = vadd.f32 %v2228_v54, %v518_v15 }
 0x1ad   : > { %v675_v38 = vpop.f32.mrb[0].mxu0  ;;  %v2412_v10 = vpop.f32.mrb[8].mxu1 }
 0x1ae   : > { %v855_v57 = vadd.f32 %v2412_v10, %v770_v12  ;;  %v677_v61 = vpop.f32.mrb[1].mxu0  ;;  %v849_v42 = vpop.f32.mrb[9].mxu1  ;;  %v2920_v47 = vadd.f32 %v675_v38, %v506_v35  ;;  %v3007_v10 = vld [vmem:[%s4102_s2 + $0x10] sm:$0xff] }
 0x1af   : > { %v850_v62 = vadd.f32 %v849_v42, %v765_v56  ;;  %v2921_v48 = vadd.f32 %v677_v61, %v506_v35  ;;  %v4228_v56 = vld [vmem:[#allocation5_spill] sm:$0xff]  ;;  %v4233_v42 = vld [vmem:[#allocation10_spill] sm:$0xff] }
 0x1b0   : > { %v873_v33 = vmax.f32 %v855_v57, 0.0  ;;  %v868_v60 = vmax.f32 %v2920_v47, 0.0  ;;  %v4231_v57 = vld [vmem:[#allocation8_spill] sm:$0xff]  ;;  %v4232_v61 = vld [vmem:[#allocation9_spill] sm:$0xff] }
 0x1b1   : > { %v870_v34 = vmax.f32 %v850_v62, 0.0  ;;  %v681_v4 = vpop.f32.mrb[2].mxu0  ;;  %v2415_v18 = vpop.f32.mrb[10].mxu1  ;;  %v869_v28 = vmax.f32 %v2921_v48, 0.0  ;;  %v4234_v62 = vld [vmem:[#allocation11_spill] sm:$0xff]  ;;  %v4235_v47 = vld [vmem:[#allocation12_spill] sm:$0xff] }
 0x1b2   : > { %v2922_v6 = vadd.f32 %v681_v4, %v510_v21  ;;  %v865_v45 = vadd.f32 %v2415_v18, %v780_v16  ;;  %v683_v51 = vpop.f32.mrb[3].mxu0  ;;  %v859_v29 = vpop.f32.mrb[11].mxu1  ;;  %v4237_v16 = vld [vmem:[#allocation14_spill] sm:$0xff]  ;;  %v4238_v48 = vld [vmem:[#allocation15_spill] sm:$0xff] }
 0x1b3   : > { %v2682_v41 = vpack.c.bf16 %v873_v33, %v870_v34  ;;  %v2923_v8 = vadd.f32 %v683_v51, %v510_v21  ;;  %v860_v30 = vadd.f32 %v859_v29, %v775_v19  ;;  %v4236_v33 = vld [vmem:[#allocation13_spill] sm:$0xff]  ;;  %v4239_v34 = vld [vmem:[#allocation16_spill] sm:$0xff]  ;;  %v4241_v4 = vld [vmem:[#allocation18_spill] sm:$0xff] }
 0x1b4   : > { %v871_v17 = vmax.f32 %v2922_v6, 0.0  ;;  %v879_v26 = vmax.f32 %v865_v45, 0.0  ;;  %v4242_v18 = vld [vmem:[#allocation19_spill] sm:$0xff]  ;;  %v4243_v19 = vld [vmem:[#allocation20_spill] sm:$0xff]  ;;  %v4244_v6 = vld [vmem:[#allocation21_spill] sm:$0xff] }
 0x1b5   : > { %v872_v11 = vmax.f32 %v2923_v8, 0.0  ;;  %v876_v22 = vmax.f32 %v860_v30, 0.0  ;;  %v687_v59 = vpop.f32.mrb[4].mxu0  ;;  %v4245_v45 = vld [vmem:[#allocation22_spill] sm:$0xff]  ;;  %v4246_v51 = vld [vmem:[#allocation23_spill] sm:$0xff]  ;;  %v4247_v29 = vld [vmem:[#allocation24_spill] sm:$0xff] }
 0x1b6   : > { %v2676_v32 = vpack.c.bf16 %v871_v17, %v868_v60  ;;  %v689_v36 = vpop.f32.mrb[5].mxu0  ;;  %v2924_v52 = vadd.f32 %v687_v59, %v514_v14  ;;  %v4249_v8 = vld [vmem:[#allocation26_spill] sm:$0xff]  ;;  %v4250_v30 = vld [vmem:[#allocation27_spill] sm:$0xff]  ;;  %v4251_v60 = vld [vmem:[#allocation28_spill] sm:$0xff] }
 0x1b7   : > { %v2674_v39 = vpack.c.bf16 %v872_v11, %v869_v28  ;;  %v2686_v46 = vpack.c.bf16 %v879_v26, %v876_v22  ;;  %v2925_v63 = vadd.f32 %v689_v36, %v514_v14  ;;  %v3005_v14 = vld [vmem:[%s4102_s2] sm:$0xff]  ;;  %v4253_v26 = vld [vmem:[#allocation30_spill] sm:$0xff]  ;;  %v4254_v28 = vld [vmem:[#allocation31_spill] sm:$0xff] }
 0x1b8   : > { %v874_v37 = vmax.f32 %v2924_v52, 0.0  ;;  %v4252_v17 = vld [vmem:[#allocation29_spill] sm:$0xff]  ;;  %v4255_v11 = vld [vmem:[#allocation32_spill] sm:$0xff]  ;;  %v4257_v59 = vld [vmem:[#allocation34_spill] sm:$0xff] }
 0x1b9   : > { %v693_v3 = vpop.f32.mrb[6].mxu0  ;;  %2675 = vmatprep.subr.bf16.mxu1 %v2674_v39  ;;  %v875_v54 = vmax.f32 %v2925_v63, 0.0  ;;  %v4256_v22 = vld [vmem:[#allocation33_spill] sm:$0xff]  ;;  %v4259_v36 = vld [vmem:[#allocation36_spill] sm:$0xff]  ;;  %v3057_v39 = vmov 36  }
 0x1ba   : > { %v2926_v20 = vadd.f32 %v693_v3, %v518_v15  ;;  %v695_v1 = vpop.f32.mrb[7].mxu0  ;;  %2677 = vmatpush1.bf16.msra.mxu1 %v2676_v32  ;;  %v4258_v32 = vld [vmem:[#allocation35_spill] sm:$0xff]  ;;  %2998 = vset.pattern.permute.xlu0 %v3057_v39  ;;  %v4260_v3 = vld [vmem:[#allocation40_spill] sm:$0xff] }
 0x1bb   : > { %v2927_v35 = vadd.f32 %v695_v1, %v518_v15  ;;  %v3006_v15 = vld [vmem:[%s4102_s2 + $0x8] sm:$0xff]  ;;  %2999 = vset.pattern.permute.xlu1 %v3057_v39  ;;  %1064 = vperm.xlu0 %2998, %v3005_v14   ;;  %v4261_v1 = vld [vmem:[#allocation41_spill] sm:$0xff] }
 0x1bc   : > { %v877_v53 = vmax.f32 %v2926_v20, 0.0  ;;  %1068 = vperm.xlu1 %2999, %v3006_v15  }
 0x1bd   : > { %v878_v21 = vmax.f32 %v2927_v35, 0.0  ;;  %v4262_v35 = vld [vmem:[#allocation42_spill] sm:$0xff] }
 0x1be   : > { %v2680_v12 = vpack.c.bf16 %v877_v53, %v874_v37  ;;  %v4263_v53 = vld [vmem:[#allocation43_spill] sm:$0xff] }
 0x1bf   : > { %v2678_v38 = vpack.c.bf16 %v878_v21, %v875_v54  ;;  %v4264_v21 = vld [vmem:[#allocation44_spill] sm:$0xff] }
 0x1c0   : > { %1072 = vperm.xlu1 %2999, %v3007_v10  }
 0x1c1   : > { %2679 = vmatprep.subr.bf16.mxu1 %v2678_v38  ;;  %v4266_v38 = vld [vmem:[#allocation46_spill] sm:$0xff] }
 0x1c2   : > { %2681 = vmatpush1.bf16.msra.mxu1 %v2680_v12  ;;  %v4265_v12 = vld [vmem:[#allocation45_spill] sm:$0xff] }
 0x1c3   : > { %2683 = vmatprep.subr.bf16.mxu1 %v2682_v41 }
 0x1c5   : > { %2124 = vmatmul.mubr.msk.f32.vlgmr.msra.gmra.mrb[12].mxu1 %vm4157_vm0, %v3005_v14 }
 0x1c6   : > { %2685 = vmatpush3.bf16.msra.mxu1 %v2682_v41  ;;  %959 = vmatprep.mubr.f32.mxu1 %v3056_v13  ;;  %v4248_v41 = vld [vmem:[#allocation25_spill] sm:$0xff] }
 0x1c7   : > { %2687 = vmatprep.subr.bf16.mxu1 %v2686_v46 }
 0x1c9   : > { %2125 = vmatmul.mubr.msk.f32.gmra.mrb[14].mxu1 %vm4157_vm0, %v3006_v15 }
 0x1ca   : > { %2689 = vmatpush3.bf16.msra.mxu1 %v2686_v46  ;;  %965 = vmatprep.mubr.f32.mxu1 %v3056_v13  ;;  %v3008_v46 = vld [vmem:[%s4102_s2 + $0x18] sm:$0xff] }
 0x1cb   : > { %2691 = vmatprep.subr.bf16.mxu1 %v3141_v5  ;;  %v4229_v5 = vld [vmem:[#allocation6_spill] sm:$0xff]  ;;  %1076 = vperm.xlu0 %2998, %v3008_v46  }
 0x1cd   : > { %2126 = vmatmul.mubr.msk.f32.gmra.mrb[16].mxu1 %vm4157_vm0, %v3168_v24  ;;  %v4230_v24 = vld [vmem:[#allocation7_spill] sm:$0xff] }
 0x1ce   : > { %971 = vmatprep.mubr.f32.mxu1 %v3056_v13 }
 0x1d1   : > { %2127 = vmatmul.mubr.msk.f32.gmra.mrb[18].mxu1 %vm4157_vm0, %v3198_v49 }
 0x1d2   : > { %2424 = vmatprep.mubr.msk.f32.mxu1 %vm4157_vm0, %v3005_v14 }
 0x1d5   : > { %2425 = vmatmul.mubr.msk.f32.vlgmr.msra.gmra.mrb[20].mxu1 %vm4157_vm0, %v3006_v15  ;;  %v4267_v15 = vld [vmem:[#allocation47_spill] sm:$0xff] }
 0x1d6   : > { %2427 = vmatprep.mubr.msk.f32.mxu1 %vm4157_vm0, %v3007_v10  ;;  %2693 = vmatpush1.bf16.msra.mxu1 %v4228_v56 }
 0x1d7   : > { %2695 = vmatprep.subr.bf16.mxu1 %v4229_v5 }
 0x1d9   : > { %2428 = vmatmul.mubr.msk.f32.gmra.mrb[22].mxu1 %vm4157_vm0, %v3198_v49  ;;  %v4240_v49 = vld [vmem:[#allocation17_spill] sm:$0xff] }
 0x1da   : > { %2697 = vmatpush1.bf16.msra.mxu1 %v4230_v24 }
 0x1db   : > { %2699 = vmatprep.subr.bf16.mxu1 %v4231_v57  ;;  %v4268_v57 = vld [vmem:[#allocation49_spill] sm:$0xff] }
 0x1de   : > { %2701 = vmatpush1.bf16.msra.mxu1 %v4232_v61  ;;  %v3061_v61 = vmov 0.041748047|0.041748047  }
 0x1df   : > { %2703 = vmatprep.subr.bf16.mxu1 %v4233_v42 }
 0x1e2   : > { %2705 = vmatpush1.bf16.msra.mxu1 %v4234_v62 }
 0x1e3   : > { %2707 = vmatprep.subr.bf16.mxu1 %v4235_v47 }
 0x1e6   : > { %2709 = vmatpush1.bf16.msra.mxu1 %v4236_v33 }
 0x1e7   : > { %2711 = vmatprep.subr.bf16.mxu1 %v4237_v16 }
 0x1ea   : > { %2713 = vmatpush1.bf16.msra.mxu1 %v4238_v48 }
 0x1eb   : > { %2715 = vmatprep.subr.bf16.mxu1 %v4239_v34 }
 0x1ee   : > { %2717 = vmatpush1.bf16.msra.mxu1 %v4240_v49 }
 0x1ef   : > { %2719 = vmatprep.subr.bf16.mxu1 %v4241_v4 }
 0x1f2   : > { %2721 = vmatpush1.bf16.msra.mxu1 %v4242_v18 }
 0x1f3   : > { %2723 = vmatprep.subr.bf16.mxu1 %v4243_v19 }
 0x1f6   : > { %2725 = vmatpush1.bf16.msra.mxu1 %v4244_v6 }
 0x1f7   : > { %2727 = vmatprep.subr.bf16.mxu1 %v4245_v45 }
 0x1fa   : > { %2729 = vmatpush1.bf16.msra.mxu1 %v4246_v51 }
 0x1fb   : > { %2731 = vmatprep.subr.bf16.mxu1 %v4247_v29 }
 0x1fe   : > { %2733 = vmatpush1.bf16.msra.mxu1 %v4248_v41 }
 0x1ff   : > { %2735 = vmatprep.subr.bf16.mxu1 %v4249_v8 }
 0x202   : > { %2737 = vmatpush1.bf16.msra.mxu1 %v4250_v30 }
 0x203   : > { %2739 = vmatprep.subr.bf16.mxu1 %v4251_v60 }
 0x206   : > { %2741 = vmatpush1.bf16.msra.mxu1 %v4252_v17 }
 0x207   : > { %2743 = vmatprep.subr.bf16.mxu1 %v4253_v26 }
 0x20a   : > { %2745 = vmatpush1.bf16.msra.mxu1 %v4254_v28 }
 0x20b   : > { %2747 = vmatprep.subr.bf16.mxu1 %v4255_v11 }
 0x20e   : > { %2749 = vmatpush1.bf16.msra.mxu1 %v4256_v22 }
 0x20f   : > { %2751 = vmatprep.subr.bf16.mxu1 %v4257_v59 }
 0x212   : > { %2753 = vmatpush1.bf16.msra.mxu1 %v4258_v32 }
 0x213   : > { %2755 = vmatprep.subr.bf16.mxu1 %v4259_v36 }
 0x23a   : > { %v1065_v26 = vpop.permute.xlu0 %1064 }
 0x23b   : > { %v1069_v17 = vpop.permute.xlu1 %1068 }
 0x23f   : > { %v1073_v28 = vpop.permute.xlu1 %1072 }
 0x24a   : > { %v1077_v11 = vpop.permute.xlu0 %1076 }
 0x298   : > { %v955_v52 = vpop.f32.mrb[12].mxu1 }
 0x299   : > { %v957_v63 = vpop.f32.mrb[13].mxu1 }
 0x29a   : > { %1143 = vmatprep.mubr.f32.mxu1 %v957_v63  ;;  %1321 = vmatprep.mubr.f32.mxu0 %v957_v63 }
 0x29b   : > { %1144 = vmatmul.mubr.f32.vlgmr.msra.gmra.mrb[24].mxu1 %v955_v52  ;;  %1322 = vmatmul.mubr.f32.vlgmr.msra.gmra.mrb[8].mxu0 %v955_v52 }
 0x29c   : > { %2757 = vmatpush1.bf16.msra.mxu1 %v4260_v3  ;;  %2821 = vmatpush3.bf16.msra.mxu0 %v3279_v0  ;;  %v961_v20 = vpop.f32.mrb[14].mxu1 }
 0x29d   : > { %2759 = vmatprep.subr.bf16.mxu1 %v4261_v1  ;;  %2823 = vmatprep.subr.bf16.mxu0 %v4262_v35  ;;  %v963_v37 = vpop.f32.mrb[15].mxu1 }
 0x29e   : > { %1326 = vmatprep.mubr.f32.mxu0 %v963_v37  ;;  %1149 = vmatprep.mubr.f32.mxu1 %v963_v37 }
 0x29f   : > { %1327 = vmatmul.mubr.f32.gmra.mrb[10].mxu0 %v961_v20  ;;  %1150 = vmatmul.mubr.f32.gmra.mrb[26].mxu1 %v961_v20 }
 0x2a0   : > { %2761 = vmatpush1.bf16.msra.mxu1 %v4263_v53  ;;  %2825 = vmatpush3.bf16.msra.mxu0 %v4262_v35  ;;  %v967_v54 = vpop.f32.mrb[16].mxu1 }
 0x2a1   : > { %2763 = vmatprep.subr.bf16.mxu1 %v4264_v21  ;;  %2827 = vmatprep.subr.bf16.mxu0 %v4265_v12  ;;  %v969_v0 = vpop.f32.mrb[17].mxu1 }
 0x2a2   : > { %1331 = vmatprep.mubr.f32.mxu0 %v969_v0  ;;  %1155 = vmatprep.mubr.f32.mxu1 %v969_v0 }
 0x2a3   : > { %1332 = vmatmul.mubr.f32.gmra.mrb[12].mxu0 %v967_v54  ;;  %1156 = vmatmul.mubr.f32.gmra.mrb[28].mxu1 %v967_v54 }
 0x2a4   : > { %2765 = vmatpush1.bf16.msra.mxu1 %v4266_v38  ;;  %2829 = vmatpush3.bf16.msra.mxu0 %v4265_v12  ;;  %v973_v14 = vpop.f32.mrb[18].mxu1 }
 0x2a5   : > { %2767 = vmatprep.subr.bf16.mxu1 %v4267_v15  ;;  %2831 = vmatprep.subr.bf16.mxu0 %v3443_v43  ;;  %v975_v10 = vpop.f32.mrb[19].mxu1 }
 0x2a6   : > { %1336 = vmatprep.mubr.f32.mxu0 %v975_v10  ;;  %1161 = vmatprep.mubr.f32.mxu1 %v975_v10 }
 0x2a7   : > { %1337 = vmatmul.mubr.f32.gmra.mrb[14].mxu0 %v973_v14  ;;  %1162 = vmatmul.mubr.f32.gmra.mrb[30].mxu1 %v973_v14 }
 0x2a8   : > { %2769 = vmatpush1.bf16.msra.mxu1 %v3462_v31  ;;  %2833 = vmatpush3.bf16.msra.mxu0 %v3443_v43  ;;  %v2426_v56 = vpop.f32.mrb[20].mxu1  ;;  %v3060_v43 = vmov 0  }
 0x2a9   : > { %2771 = vmatprep.subr.bf16.mxu1 %v3472_v44  ;;  %2835 = vmatprep.subr.bf16.mxu0 %v3474_v27  ;;  %v1044_v5 = vpop.f32.mrb[21].mxu1  ;;  %v3673_v44 = vld [vmem:[%s4102_s2 + $0x22] sm:$0x1] }
 0x2aa   : > { %1232 = vmatprep.mubr.f32.mxu1 %v3056_v13  ;;  %2462 = vmatprep.mubr.f32.mxu0 %v1044_v5 }
 0x2ab   : > { %3001 = vset.pattern.permute.xlu0 %v3060_v43 }
 0x2ac   : > { %2773 = vmatpush1.bf16.msra.mxu1 %v3488_v58  ;;  %2837 = vmatpush3.bf16.msra.mxu0 %v3474_v27  ;;  %v2429_v24 = vpop.f32.mrb[22].mxu1  ;;  %v3058_v27 = vmov 0.0|0.0   ;;  %v4269_v58 = vlaneseq }
 0x2ad   : > { %2775 = vmatprep.subr.bf16.mxu1 %v4268_v57  ;;  %2839 = vmatprep.subr.bf16.mxu0 %v3496_v55  ;;  %v1054_v31 = vpop.f32.mrb[23].mxu1 }
 0x2ae   : > { %1585 = vperm.xlu0 %3001, %v3673_v44  }
 0x2b0   : > { %2777 = vmatpush1.bf16.msra.mxu1 %v3506_v25  ;;  %2841 = vmatpush3.bf16.msra.mxu0 %v3496_v55  ;;  %v1662_v55 = vand.u32 127, %v4269_v58 }
 0x2b1   : > { %2779 = vmatprep.subr.bf16.mxu1 %v3514_v23  ;;  %2843 = vmatprep.subr.bf16.mxu0 %v3516_v40  ;;  %v4270_v23 = vld [vmem:[#allocation37_spill] sm:$0xff] }
 0x2b2   : > { %v1712_v25 = vadd.s32 1, %v1662_v55  ;;  %v1648_v42 = vadd.s32 280, %v4270_v23  ;;  %v1649_v62 = vadd.s32 288, %v4270_v23  ;;  %v1650_v47 = vadd.s32 296, %v4270_v23 }
 0x2b3   : > { %v1651_v33 = vadd.s32 304, %v4270_v23  ;;  %v1652_v16 = vadd.s32 312, %v4270_v23  ;;  %v1653_v48 = vadd.s32 320, %v4270_v23  ;;  %v1654_v34 = vadd.s32 328, %v4270_v23 }
 0x2b4   : > { %2781 = vmatpush1.bf16.msra.mxu1 %v3520_v2  ;;  %2845 = vmatpush3.bf16.msra.mxu0 %v3516_v40  ;;  %v1645_v40 = vadd.s32 256, %v4270_v23  ;;  %v1646_v2 = vadd.s32 264, %v4270_v23 }
 0x2b5   : > { %2783 = vmatprep.subr.bf16.mxu1 %v3522_v9  ;;  %2847 = vmatprep.subr.bf16.mxu0 %v3534_v50  ;;  %v3679_v9 = vmul.u32 24, %v1662_v55 }
 0x2b7   : > { %vm1696_vm2 = vcmp.ge.s32.totalorder %v1645_v40, %v3679_v9  ;;  %vm1697_vm4 = vcmp.ge.s32.totalorder %v1646_v2, %v3679_v9  ;;  %vm1699_vm11 = vcmp.ge.s32.totalorder %v1648_v42, %v3679_v9 }
 0x2b8   : > { %2785 = vmatpush1.bf16.msra.mxu1 %v3540_v7  ;;  %2849 = vmatpush3.bf16.msra.mxu0 %v3534_v50  ;;  %v3681_v50 = vmul.u32 24, %v1712_v25  ;;  %v1647_v7 = vadd.s32 272, %v4270_v23  ;;  %v1629_v25 = vadd.s32 128, %v4270_v23 }
 0x2b9   : > { %2896 = vmatprep.subr.bf16.mxu1 %v3058_v27 }
 0x2ba   : > { %vm1746_vm3 = vcmp.lt.s32.totalorder %v1645_v40, %v3681_v50  ;;  %vm1747_vm5 = vcmp.lt.s32.totalorder %v1646_v2, %v3681_v50  ;;  %vm1698_vm9 = vcmp.ge.s32.totalorder %v1647_v7, %v3679_v9  ;;  %vm1748_vm10 = vcmp.lt.s32.totalorder %v1647_v7, %v3681_v50 }
 0x2bb   : > { %1233 = vmatmul.mubr.f32.vlgmr.msra.gmra.mrb[24].mxu1 %v1044_v5  ;;  %2463 = vmatmul.mubr.f32.vlgmr.msra.gmra.mrb[16].mxu0 %v2426_v56  ;;  %vm1794_vm6 = vmand %vm1696_vm2, %vm1746_vm3  ;;  %vm1749_vm12 = vcmp.lt.s32.totalorder %v1648_v42, %v3681_v50  ;;  %vm1700_vm2 = vcmp.ge.s32.totalorder %v1649_v62, %v3679_v9  ;;  %vm1750_vm3 = vcmp.lt.s32.totalorder %v1649_v62, %v3681_v50  ;;  %v1630_v7 = vadd.s32 136, %v4270_v23 }
 0x2bc   : > { %1238 = vmatprep.mubr.f32.mxu1 %v3056_v13  ;;  %2465 = vmatprep.mubr.f32.mxu0 %v1054_v31  ;;  %vm1795_vm7 = vmand %vm1697_vm4, %vm1747_vm5  ;;  %vm1701_vm4 = vcmp.ge.s32.totalorder %v1650_v47, %v3679_v9  ;;  %vm1751_vm5 = vcmp.lt.s32.totalorder %v1650_v47, %v3681_v50  ;;  %v1614_v47 = vadd.s32 8, %v4270_v23 }
 0x2bd   : > { %vm2897_vm8 = vmpackc.low %vm1795_vm7, %vm1794_vm6 }
 0x2be   : > { %2898 = vmatpush3.bf16.msk.msra.mxu1 %vm2897_vm8, %v3061_v61  ;;  %vm1796_vm13 = vmand %vm1698_vm9, %vm1748_vm10  ;;  %vm1702_vm9 = vcmp.ge.s32.totalorder %v1651_v33, %v3679_v9  ;;  %vm1752_vm10 = vcmp.lt.s32.totalorder %v1651_v33, %v3681_v50 }
 0x2bf   : > { %1239 = vmatmul.mubr.f32.gmra.mrb[26].mxu1 %v2426_v56  ;;  %2466 = vmatmul.mubr.f32.gmra.mrb[18].mxu0 %v2429_v24  ;;  %vm1797_vm14 = vmand %vm1699_vm11, %vm1749_vm12  ;;  %vm1703_vm11 = vcmp.ge.s32.totalorder %v1652_v16, %v3679_v9  ;;  %vm1753_vm12 = vcmp.lt.s32.totalorder %v1652_v16, %v3681_v50  ;;  %v1631_v16 = vadd.s32 144, %v4270_v23 }
 0x2c0   : > { %1244 = vmatprep.mubr.f32.mxu1 %v3056_v13  ;;  %1506 = vmatprep.mubr.f32.mxu0 %v3056_v13  ;;  %vm2900_vm15 = vmpackc.low %vm1797_vm14, %vm1796_vm13 }
 0x2c1   : > { %2899 = vmatprep.subr.bf16.mxu1 %v3058_v27  ;;  %vm1798_vm6 = vmand %vm1700_vm2, %vm1750_vm3  ;;  %vm1704_vm2 = vcmp.ge.s32.totalorder %v1653_v48, %v3679_v9  ;;  %vm1754_vm3 = vcmp.lt.s32.totalorder %v1653_v48, %v3681_v50  ;;  %v1632_v48 = vadd.s32 152, %v4270_v23 }
 0x2c2   : > { %2901 = vmatpush3.bf16.msk.msra.mxu1 %vm2900_vm15, %v3061_v61  ;;  %vm1799_vm7 = vmand %vm1701_vm4, %vm1751_vm5  ;;  %vm1705_vm4 = vcmp.ge.s32.totalorder %v1654_v34, %v3679_v9  ;;  %vm1755_vm5 = vcmp.lt.s32.totalorder %v1654_v34, %v3681_v50 }
 0x2c3   : > { %1245 = vmatmul.mubr.f32.gmra.mrb[28].mxu1 %v1054_v31  ;;  %2902 = vmatprep.subr.bf16.mxu1 %v3058_v27  ;;  %vm2903_vm8 = vmpackc.low %vm1799_vm7, %vm1798_vm6 }
 0x2c4   : > { %1250 = vmatprep.mubr.f32.mxu1 %v3056_v13  ;;  %vm1800_vm13 = vmand %vm1702_vm9, %vm1752_vm10  ;;  %vm1680_vm9 = vcmp.ge.s32.totalorder %v1629_v25, %v3679_v9  ;;  %vm1730_vm10 = vcmp.lt.s32.totalorder %v1629_v25, %v3681_v50  ;;  %v1623_v25 = vadd.s32 80, %v4270_v23 }
 0x2c5   : > { %vm1801_vm14 = vmand %vm1703_vm11, %vm1753_vm12  ;;  %vm1681_vm11 = vcmp.ge.s32.totalorder %v1630_v7, %v3679_v9  ;;  %vm1731_vm12 = vcmp.lt.s32.totalorder %v1630_v7, %v3681_v50  ;;  %v1641_v7 = vadd.s32 224, %v4270_v23 }
 0x2c6   : > { %2904 = vmatpush3.bf16.msk.msra.mxu1 %vm2903_vm8, %v3061_v61  ;;  %vm2906_vm15 = vmpackc.low %vm1801_vm14, %vm1800_vm13  ;;  %vm1664_vm13 = vcmp.ge.s32.totalorder %v4270_v23, %v3679_v9  ;;  %vm1665_vm14 = vcmp.ge.s32.totalorder %v1614_v47, %v3679_v9 }
 0x2c7   : > { %1251 = vmatmul.mubr.f32.gmra.mrb[30].mxu1 %v2429_v24  ;;  %2905 = vmatprep.subr.bf16.mxu1 %v3058_v27  ;;  %vm1802_vm6 = vmand %vm1704_vm2, %vm1754_vm3  ;;  %vm1715_vm3 = vcmp.lt.s32.totalorder %v1614_v47, %v3681_v50 }
 0x2c8   : > { %2511 = vmatprep.mubr.msk.f32.mxu1 %vm4156_vm1, %v3056_v13  ;;  %vm1803_vm7 = vmand %vm1705_vm4, %vm1755_vm5  ;;  %vm1682_vm4 = vcmp.ge.s32.totalorder %v1631_v16, %v3679_v9 }
 0x2c9   : > { %vm2909_vm8 = vmpackc.low %vm1803_vm7, %vm1802_vm6  ;;  %vm1732_vm6 = vcmp.lt.s32.totalorder %v1631_v16, %v3681_v50  ;;  %v1625_v16 = vadd.s32 96, %v4270_v23 }
 0x2ca   : > { %2907 = vmatpush3.bf16.msk.msra.mxu1 %vm2906_vm15, %v3061_v61  ;;  %vm1714_vm15 = vcmp.lt.s32.totalorder %v4270_v23, %v3681_v50  ;;  %vm3743_vm2 = vmand %vm1680_vm9, %vm1730_vm10  ;;  %vm1733_vm9 = vcmp.lt.s32.totalorder %v1632_v48, %v3681_v50 }
 0x2cb   : > { %2908 = vmatprep.subr.bf16.mxu1 %v3058_v27  ;;  %vm3749_vm5 = vmand %vm1681_vm11, %vm1731_vm12 }
 0x2cc   : > { %vm3755_vm7 = vmand %vm1664_vm13, %vm1714_vm15 }
 0x2cd   : > { %vm3764_vm10 = vmand %vm1665_vm14, %vm1715_vm3 }
 0x2ce   : > { %2910 = vmatpush3.bf16.msk.msra.mxu1 %vm2909_vm8, %v3061_v61  ;;  %vm1683_vm8 = vcmp.ge.s32.totalorder %v1632_v48, %v3679_v9  ;;  %vm3777_vm15 = vmand %vm1682_vm4, %vm1732_vm6  ;;  %v4344_v48 = vmov 0 }
 0x2cf   : > { %2911 = vmatprep.subr.bf16.mxu1 %v3058_v27  ;;  %vm3784_vm1 = vmand %vm1683_vm8, %vm1733_vm9 }
 0x36e   : > { %v2289_v49 = vpop.f32.mrb[8].mxu0 }
 0x36f   : > { %v2290_v4 = vpop.f32.mrb[9].mxu0 }
 0x370   : > { %v2291_v18 = vadd.f32 %v2290_v4, %v2289_v49  ;;  %v1615_v4 = vadd.s32 16, %v4270_v23 }
 0x372   : > { %v2292_v19 = vpop.f32.mrb[10].mxu0  ;;  %v1324_v36 = vadd.f32 %v2291_v18, %v1065_v26  ;;  %vm1666_vm11 = vcmp.ge.s32.totalorder %v1615_v4, %v3679_v9  ;;  %vm1716_vm12 = vcmp.lt.s32.totalorder %v1615_v4, %v3681_v50  ;;  %v1655_v4 = vadd.s32 336, %v4270_v23 }
 0x373   : > { %v2293_v6 = vpop.f32.mrb[11].mxu0  ;;  %vm3796_vm4 = vmand %vm1666_vm11, %vm1716_vm12 }
 0x374   : > { %v2294_v45 = vadd.f32 %v2293_v6, %v2292_v19  ;;  %v1616_v6 = vadd.s32 24, %v4270_v23 }
 0x376   : > { %v2295_v51 = vpop.f32.mrb[12].mxu0  ;;  %v1329_v22 = vadd.f32 %v2294_v45, %v1069_v17  ;;  %vm1667_vm14 = vcmp.ge.s32.totalorder %v1616_v6, %v3679_v9  ;;  %vm1717_vm3 = vcmp.lt.s32.totalorder %v1616_v6, %v3681_v50  ;;  %v1644_v6 = vadd.s32 248, %v4270_v23 }
 0x377   : > { %v2296_v29 = vpop.f32.mrb[13].mxu0  ;;  %vm3812_vm11 = vmand %vm1667_vm14, %vm1717_vm3 }
 0x378   : > { %v2297_v41 = vadd.f32 %v2296_v29, %v2295_v51 }
 0x37a   : > { %v2298_v8 = vpop.f32.mrb[14].mxu0  ;;  %v1334_v21 = vadd.f32 %v2297_v41, %v1073_v28  ;;  %v4271_v41 = vmov 0 }
 0x37b   : > { %v2299_v30 = vpop.f32.mrb[15].mxu0  ;;  %v4272_v41 = vsel %vm3743_vm2, 4294967295, %v4271_v41 }
 0x37c   : > { %v2300_v60 = vadd.f32 %v2299_v30, %v2298_v8 }
 0x37e   : > { %v1339_v1 = vadd.f32 %v2300_v60, %v1077_v11  ;;  %v4273_v60 = vmov 0 }
 0x37f   : > { %v4274_v60 = vsel %vm3749_vm5, 4294967295, %v4273_v60 }
 0x38e   : > { %v1234_v59 = vpop.f32.mrb[24].mxu1  ;;  %v2464_v32 = vpop.f32.mrb[16].mxu0 }
 0x38f   : > { %v1414_v39 = vadd.f32 %v2464_v32, %v1329_v22  ;;  %v1236_v46 = vpop.f32.mrb[25].mxu1  ;;  %v1408_v52 = vpop.f32.mrb[17].mxu0  ;;  %v2928_v3 = vadd.f32 %v1234_v59, %v1065_v26  ;;  %v4277_v59 = vmov 0  ;;  %v1617_v32 = vadd.s32 32, %v4270_v23 }
 0x390   : > { %v1409_v63 = vadd.f32 %v1408_v52, %v1324_v36  ;;  %v2929_v35 = vadd.f32 %v1236_v46, %v1065_v26  ;;  %v4278_v59 = vsel %vm3764_vm10, 4294967295, %v4277_v59  ;;  %v4279_v36 = vmov 0 }
 0x391   : > { %v1432_v20 = vmax.f32 %v1414_v39, 0.0  ;;  %v1427_v5 = vmax.f32 %v2928_v3, 0.0  ;;  %v4280_v36 = vsel %vm3777_vm15, 4294967295, %v4279_v36  ;;  %v1618_v39 = vadd.s32 40, %v4270_v23 }
 0x392   : > { %v1429_v37 = vmax.f32 %v1409_v63, 0.0  ;;  %v1240_v53 = vpop.f32.mrb[26].mxu1  ;;  %v2467_v54 = vpop.f32.mrb[18].mxu0  ;;  %v1428_v31 = vmax.f32 %v2929_v35, 0.0  ;;  %v4281_v46 = vmov 0  ;;  %v1635_v52 = vadd.s32 176, %v4270_v23 }
 0x393   : > { %v2930_v12 = vadd.f32 %v1240_v53, %v1069_v17  ;;  %v1424_v0 = vadd.f32 %v2467_v54, %v1339_v1  ;;  %v1242_v38 = vpop.f32.mrb[27].mxu1  ;;  %v1418_v14 = vpop.f32.mrb[19].mxu0  ;;  %v4282_v46 = vsel %vm3784_vm1, 4294967295, %v4281_v46  ;;  %v337_v63 = vld [vmem:[%s4102_s2 + $0x20] sm:$0x3]  ;;  %v4283_v3 = vmov 0 }
 0x394   : > { %v3721_v15 = vpack.c.bf16 %v1432_v20, %v1429_v37  ;;  %v2931_v10 = vadd.f32 %v1242_v38, %v1069_v17  ;;  %v1419_v56 = vadd.f32 %v1418_v14, %v1334_v21  ;;  %v1633_v17 = vadd.s32 160, %v4270_v23 }
 0x395   : > { %v1430_v24 = vmax.f32 %v2930_v12, 0.0  ;;  %v1438_v57 = vmax.f32 %v1424_v0, 0.0  ;;  %v4284_v3 = vsel %vm3796_vm4, 4294967295, %v4283_v3  ;;  %v1636_v20 = vadd.s32 184, %v4270_v23 }
 0x396   : > { %v1431_v43 = vmax.f32 %v2931_v10, 0.0  ;;  %v1435_v58 = vmax.f32 %v1419_v56, 0.0  ;;  %v1246_v55 = vpop.f32.mrb[28].mxu1  ;;  %vm1734_vm13 = vcmp.lt.s32.totalorder %v1633_v17, %v3681_v50  ;;  %v4285_v1 = vmov 0 }
 0x397   : > { %v2852_v40 = vpack.c.bf16 %v1430_v24, %v1427_v5  ;;  %v1248_v2 = vpop.f32.mrb[29].mxu1  ;;  %v2932_v33 = vadd.f32 %v1246_v55, %v1073_v28  ;;  %v4286_v1 = vsel %vm3812_vm11, 4294967295, %v4285_v1  ;;  %vm1668_vm12 = vcmp.ge.s32.totalorder %v1617_v32, %v3679_v9 }
 0x398   : > { %v2850_v42 = vpack.c.bf16 %v1431_v43, %v1428_v31  ;;  %v3725_v62 = vpack.c.bf16 %v1438_v57, %v1435_v58  ;;  %v2933_v34 = vadd.f32 %v1248_v2, %v1073_v28  ;;  %v4275_v28 = vmov 0 }
 0x399   : > { %v1433_v51 = vmax.f32 %v2932_v33, 0.0  ;;  %v4276_v28 = vsel %vm3755_vm7, 4294967295, %v4275_v28  ;;  %vm1718_vm0 = vcmp.lt.s32.totalorder %v1617_v32, %v3681_v50  ;;  %vm4287_vm5 = vcmp.ge.s32.totalorder %v1633_v17, %v3679_v9 }
 0x39a   : > { %v1252_v49 = vpop.f32.mrb[30].mxu1  ;;  %2851 = vmatprep.subr.bf16.mxu0 %v2850_v42  ;;  %v1434_v8 = vmax.f32 %v2933_v34, 0.0  ;;  %vm3824_vm9 = vmand %vm4287_vm5, %vm1734_vm13  ;;  %v4288_v35 = vmov 0  ;;  %vm1669_vm14 = vcmp.ge.s32.totalorder %v1618_v39, %v3679_v9  ;;  %vm1719_vm3 = vcmp.lt.s32.totalorder %v1618_v39, %v3681_v50 }
 0x39b   : > { %v2934_v18 = vadd.f32 %v1252_v49, %v1077_v11  ;;  %v1254_v19 = vpop.f32.mrb[31].mxu1  ;;  %2853 = vmatpush1.bf16.msra.mxu0 %v2852_v40  ;;  %v4289_v35 = vsel %vm3824_vm9, 4294967295, %v4288_v35  ;;  %vm4290_vm7 = vcmask 261120   ;;  %v4291_v37 = vmov 0  ;;  %vm3840_vm13 = vmand %vm1668_vm12, %vm1718_vm0 }
 0x39c   : > { %v2935_v45 = vadd.f32 %v1254_v19, %v1077_v11  ;;  %v1634_v11 = vadd.s32 168, %v4270_v23  ;;  %vm1686_vm11 = vcmp.ge.s32.totalorder %v1635_v52, %v3679_v9  ;;  %vm1736_vm2 = vcmp.lt.s32.totalorder %v1635_v52, %v3681_v50  ;;  %vm3852_vm1 = vmand %vm1669_vm14, %vm1719_vm3 }
 0x39d   : > { %v1436_v29 = vmax.f32 %v2934_v18, 0.0  ;;  %vm4293_vm5 = vmmov 0   ;;  %v4294_v53 = vmov 0  ;;  %vm1687_vm15 = vcmp.ge.s32.totalorder %v1636_v20, %v3679_v9  ;;  %vm3857_vm0 = vmand %vm1686_vm11, %vm1736_vm2 }
 0x39e   : > { %v1437_v30 = vmax.f32 %v2935_v45, 0.0  ;;  %vm1685_vm6 = vcmp.ge.s32.totalorder %v1634_v11, %v3679_v9  ;;  %vm1735_vm8 = vcmp.lt.s32.totalorder %v1634_v11, %v3681_v50  ;;  %v4295_v53 = vsel %vm3840_vm13, 4294967295, %v4294_v53 }
 0x39f   : > { %v2856_v26 = vpack.c.bf16 %v1436_v29, %v1433_v51  ;;  %vm3831_vm10 = vmand %vm1685_vm6, %vm1735_vm8  ;;  %v1619_v54 = vadd.s32 48, %v4270_v23  ;;  %v4297_v21 = vmov 0  ;;  %v1620_v12 = vadd.s32 56, %v4270_v23 }
 0x3a0   : > { %v2854_v22 = vpack.c.bf16 %v1437_v30, %v1434_v8  ;;  %v4292_v37 = vsel %vm3831_vm10, 4294967295, %v4291_v37  ;;  %v4298_v21 = vsel %vm3852_vm1, 4294967295, %v4297_v21  ;;  %v4299_v0 = vmov 0 }
 0x3a1   : > { %v4300_v0 = vsel %vm3857_vm0, 4294967295, %v4299_v0  ;;  %v1637_v38 = vadd.s32 192, %v4270_v23  ;;  %v4301_v14 = vmov 0  ;;  %vm1670_vm2 = vcmp.ge.s32.totalorder %v1619_v54, %v3679_v9 }
 0x3a2   : > { %2855 = vmatprep.subr.bf16.mxu0 %v2854_v22  ;;  %vm1720_vm11 = vcmp.lt.s32.totalorder %v1619_v54, %v3681_v50  ;;  %v1621_v10 = vadd.s32 64, %v4270_v23  ;;  %vm4304_vm3 = vnez %v4272_v41  ;;  %vm1671_vm14 = vcmp.ge.s32.totalorder %v1620_v12, %v3679_v9  ;;  %v4359_v54 = vld [vmem:[#allocation48_spill] sm:$0xff] }
 0x3a3   : > { %2857 = vmatpush1.bf16.msra.mxu0 %v2856_v26  ;;  %vm1721_vm8 = vcmp.lt.s32.totalorder %v1620_v12, %v3681_v50  ;;  %v1622_v56 = vadd.s32 72, %v4270_v23  ;;  %vm1688_vm10 = vcmp.ge.s32.totalorder %v1637_v38, %v3679_v9  ;;  %v4307_v5 = vmov 0  ;;  %v4360_v12 = vld [vmem:[#allocation38_spill] sm:$0xff] }
 0x3a4   : > { %2858 = vmatprep.subr.bf16.mxu0 %v3058_v27  ;;  %vm4309_vm1 = vnez %v4278_v59  ;;  %vm4310_vm4 = vnez %v4276_v28  ;;  %vm3907_vm0 = vmand %vm1671_vm14, %vm1721_vm8  ;;  %v4312_v24 = vmov 0  ;;  %v4317_v57 = vmov 0 }
 0x3a5   : > { %vm4311_vm9 = vmpackc.low %vm4309_vm1, %vm4310_vm4  ;;  %v4313_v24 = vsel %vm3907_vm0, 4294967295, %v4312_v24  ;;  %vm1673_vm1 = vcmp.ge.s32.totalorder %v1622_v56, %v3679_v9  ;;  %vm1723_vm4 = vcmp.lt.s32.totalorder %v1622_v56, %v3681_v50  ;;  %v1639_v31 = vadd.s32 208, %v4270_v23 }
 0x3a6   : > { %2132 = vmatmul.mubr.msk.f32.vlgmr.msra.gmra.mrb[20].mxu0 %vm4290_vm7, %v337_v63  ;;  %vm1737_vm7 = vcmp.lt.s32.totalorder %v1636_v20, %v3681_v50  ;;  %v4319_v43 = vmov 0  ;;  %v1640_v58 = vadd.s32 216, %v4270_v23  ;;  %v4321_v55 = vmov 0 }
 0x3a7   : > { %2860 = vmatpush3.bf16.msra.mxu0 %v3721_v15  ;;  %2476 = vmatprep.mubr.msk.f32.mxu0 %vm4293_vm5, %v3056_v13  ;;  %vm3862_vm12 = vmand %vm1687_vm15, %vm1737_vm7  ;;  %v1638_v15 = vadd.s32 200, %v4270_v23  ;;  %vm4303_vm15 = vnez %v4274_v60  ;;  %v4326_v40 = vmov 0  ;;  %v1624_v2 = vadd.s32 88, %v4270_v23 }
 0x3a8   : > { %2861 = vmatprep.subr.bf16.mxu0 %v3058_v27  ;;  %v4302_v14 = vsel %vm3862_vm12, 4294967295, %v4301_v14  ;;  %vm4305_vm5 = vmpackc.low %vm4303_vm15, %vm4304_vm3  ;;  %vm1738_vm15 = vcmp.lt.s32.totalorder %v1637_v38, %v3681_v50  ;;  %vm4306_vm3 = vcmask 261120   ;;  %vm4315_vm12 = vnez %v4280_v36 }
 0x3a9   : > { %vm1689_vm7 = vcmp.ge.s32.totalorder %v1638_v15, %v3679_v9  ;;  %vm1739_vm13 = vcmp.lt.s32.totalorder %v1638_v15, %v3681_v50  ;;  %vm3919_vm6 = vmand %vm1688_vm10, %vm1738_vm15  ;;  %vm4323_vm10 = vnez %v4286_v1  ;;  %v1642_v42 = vadd.s32 232, %v4270_v23  ;;  %v4358_v1 = vld [vmem:[#allocation39_spill] sm:$0xff] }
 0x3aa   : > { %v4318_v57 = vsel %vm3919_vm6, 4294967295, %v4317_v57  ;;  %vm3942_vm15 = vmand %vm1673_vm1, %vm1723_vm4  ;;  %vm1740_vm1 = vcmp.lt.s32.totalorder %v1639_v31, %v3681_v50  ;;  %vm4333_vm4 = vnez %v4295_v53  ;;  %v1626_v34 = vadd.s32 104, %v4270_v23 }
 0x3ab   : > { %2863 = vmatpush3.bf16.msra.mxu0 %v3725_v62  ;;  %v4327_v40 = vsel %vm3942_vm15, 4294967295, %v4326_v40  ;;  %v1656_v18 = vadd.s32 344, %v4270_v23  ;;  %v1643_v19 = vadd.s32 240, %v4270_v23  ;;  %v1627_v45 = vadd.s32 112, %v4270_v23 }
 0x3ac   : > { %2865 = vmatprep.subr.msk.bf16.mxu0 %vm4305_vm5, %v3061_v61  ;;  %vm3895_vm5 = vmand %vm1670_vm2, %vm1720_vm11  ;;  %vm1672_vm2 = vcmp.ge.s32.totalorder %v1621_v10, %v3679_v9  ;;  %vm1722_vm11 = vcmp.lt.s32.totalorder %v1621_v10, %v3681_v50  ;;  %v1628_v51 = vadd.s32 120, %v4270_v23  ;;  %v1657_v29 = vadd.s32 352, %v4270_v23 }
 0x3ad   : > { %v4308_v5 = vsel %vm3895_vm5, 4294967295, %v4307_v5  ;;  %vm3931_vm8 = vmand %vm1672_vm2, %vm1722_vm11  ;;  %vm1725_vm2 = vcmp.lt.s32.totalorder %v1624_v2, %v3681_v50  ;;  %v1658_v41 = vadd.s32 360, %v4270_v23  ;;  %v1659_v8 = vadd.s32 368, %v4270_v23 }
 0x3ae   : > { %2477 = vmatmul.mubr.msk.f32.vlgmr.msra.gmra.mrb[22].mxu0 %vm4306_vm3, %v337_v63  ;;  %vm4314_vm3 = vnez %v4282_v46  ;;  %v4322_v55 = vsel %vm3931_vm8, 4294967295, %v4321_v55  ;;  %vm4338_vm8 = vnez %v4300_v0  ;;  %v1660_v30 = vadd.s32 376, %v4270_v23  ;;  %v1586_v63 = vpop.permute.xlu0 %1585 }
 0x3af   : > { %2867 = vmatpush3.bf16.msk.msra.mxu0 %vm4311_vm9, %v3061_v61  ;;  %vm4316_vm5 = vmpackc.low %vm4314_vm3, %vm4315_vm12  ;;  %vm4324_vm12 = vnez %v4284_v3  ;;  %vm1690_vm3 = vcmp.ge.s32.totalorder %v1639_v31, %v3679_v9  ;;  %v3062_v60 = vmov 1   ;;  %v3063_v3 = vmov 1983009808  }
 0x3b0   : > { %2869 = vmatprep.subr.msk.bf16.mxu0 %vm4316_vm5, %v3061_v61  ;;  %vm3926_vm9 = vmand %vm1689_vm7, %vm1739_vm13  ;;  %vm4328_vm13 = vnez %v4292_v37  ;;  %vm4329_vm7 = vnez %v4289_v35  ;;  %3000 = vset.pattern.permute.xlu1 %v3062_v60  ;;  %v2029_v20 = vunpack.c.l.s4 %v3063_v3  ;;  %v2017_v10 = vrot.slane %v3056_v13, 7 }
 0x3b1   : > { %v4320_v43 = vsel %vm3926_vm9, 4294967295, %v4319_v43  ;;  %vm4325_vm14 = vmpackc.low %vm4323_vm10, %vm4324_vm12  ;;  %vm1691_vm10 = vcmp.ge.s32.totalorder %v1640_v58, %v3679_v9  ;;  %vm1741_vm12 = vcmp.lt.s32.totalorder %v1640_v58, %v3681_v50  ;;  %vm1675_vm9 = vcmp.ge.s32.totalorder %v1624_v2, %v3679_v9  ;;  %3002 = vset.pattern.permute.xlu0 %v3062_v60  ;;  %1859 = vperm.xlu1 %3000, %v3673_v44   ;;  %v2134_v44 = vld [vmem:[%s3336_s18 + $0x3] ss:$4 sm:$0x7] }
 0x3b2   : > { %vm4330_vm5 = vmpackc.low %vm4328_vm13, %vm4329_vm7  ;;  %vm1674_vm13 = vcmp.ge.s32.totalorder %v1623_v25, %v3679_v9  ;;  %vm1724_vm7 = vcmp.lt.s32.totalorder %v1623_v25, %v3681_v50  ;;  %v1601_v35 = vrot.slane %v2134_v44, %v4358_v1  ;;  %v1597_v0 = vrot.slane %v2134_v44, %v4360_v12 }
 0x3b3   : > { %2871 = vmatpush3.bf16.msk.msra.mxu0 %vm4325_vm14, %v3061_v61  ;;  %vm3979_vm6 = vmand %vm1690_vm3, %vm1740_vm1  ;;  %vm4337_vm14 = vnez %v4302_v14  ;;  %vm1742_vm3 = vcmp.lt.s32.totalorder %v1641_v7, %v3681_v50  ;;  %v2030_v14 = vunpack.c.0.s8 %v2029_v20 }
 0x3b4   : > { %2873 = vmatprep.subr.msk.bf16.mxu0 %vm4330_vm5, %v3061_v61  ;;  %vm4332_vm5 = vnez %v4298_v21  ;;  %vm4339_vm15 = vmpackc.low %vm4337_vm14, %vm4338_vm8  ;;  %v1605_v21 = vrot.slane %v2134_v44, %v4359_v54 }
 0x3b5   : > { %vm4334_vm11 = vmpackc.low %vm4332_vm5, %vm4333_vm4  ;;  %vm1693_vm4 = vcmp.ge.s32.totalorder %v1642_v42, %v3679_v9  ;;  %vm1743_vm5 = vcmp.lt.s32.totalorder %v1642_v42, %v3681_v50 }
 0x3b6   : > { %vm3991_vm0 = vmand %vm1691_vm10, %vm1741_vm12  ;;  %vm4347_vm10 = vnez %v4308_v5 }
 0x3b7   : > { %2875 = vmatpush3.bf16.msk.msra.mxu0 %vm4334_vm11, %v3061_v61  ;;  %vm1692_vm11 = vcmp.ge.s32.totalorder %v1641_v7, %v3679_v9  ;;  %vm3997_vm1 = vmand %vm1674_vm13, %vm1724_vm7  ;;  %vm4351_vm13 = vnez %v4320_v43  ;;  %v2033_v43 = vsub.s32 %v2030_v14, %v4270_v23 }
 0x3b8   : > { %2877 = vmatprep.subr.msk.bf16.mxu0 %vm4339_vm15, %v3061_v61  ;;  %vm4004_vm8 = vmand %vm1675_vm9, %vm1725_vm2  ;;  %vm4346_vm15 = vnez %v4313_v24  ;;  %vm4352_vm9 = vnez %v4318_v57 }
 0x3b9   : > { %v4345_v48 = vsel %vm4004_vm8, 4294967295, %v4344_v48  ;;  %vm4348_vm12 = vmpackc.low %vm4346_vm15, %vm4347_vm10  ;;  %vm1676_vm15 = vcmp.ge.s32.totalorder %v1625_v16, %v3679_v9 }
 0x3ba   : > { %vm4015_vm14 = vmand %vm1692_vm11, %vm1742_vm3  ;;  %vm1726_vm11 = vcmp.lt.s32.totalorder %v1625_v16, %v3681_v50  ;;  %vm4354_vm3 = vnez %v4345_v48 }
 0x3bb   : > { %2879 = vmatpush3.bf16.msk.msra.mxu0 %vm4348_vm12, %v3061_v61  ;;  %vm4353_vm2 = vmpackc.low %vm4351_vm13, %vm4352_vm9  ;;  %vm1677_vm12 = vcmp.ge.s32.totalorder %v1626_v34, %v3679_v9  ;;  %vm1727_vm13 = vcmp.lt.s32.totalorder %v1626_v34, %v3681_v50 }
 0x3bc   : > { %2881 = vmatprep.subr.msk.bf16.mxu0 %vm4353_vm2, %v3061_v61  ;;  %vm1791_vm7 = vmand %vm1693_vm4, %vm1743_vm5  ;;  %vm4355_vm4 = vnez %v4327_v40  ;;  %vm4356_vm5 = vnez %v4322_v55 }
 0x3bd   : > { %vm2884_vm8 = vmpackc.low %vm3991_vm0, %vm3979_vm6 }
 0x3be   : > { %vm2886_vm10 = vmpackc.low %vm4354_vm3, %vm3997_vm1  ;;  %vm1694_vm3 = vcmp.ge.s32.totalorder %v1643_v19, %v3679_v9 }
 0x3bf   : > { %vm4357_vm9 = vmpackc.low %vm4355_vm4, %vm4356_vm5  ;;  %vm1745_vm4 = vcmp.lt.s32.totalorder %v1644_v6, %v3681_v50 }
 0x3c0   : > { %2883 = vmatpush3.bf16.msk.msra.mxu0 %vm4357_vm9, %v3061_v61  ;;  %vm2888_vm6 = vmpackc.low %vm1791_vm7, %vm4015_vm14  ;;  %vm1706_vm14 = vcmp.ge.s32.totalorder %v1655_v4, %v3679_v9  ;;  %vm1756_vm7 = vcmp.lt.s32.totalorder %v1655_v4, %v3681_v50 }
 0x3c1   : > { %2885 = vmatprep.subr.msk.bf16.mxu0 %vm2884_vm8, %v3061_v61  ;;  %vm1774_vm0 = vmand %vm1676_vm15, %vm1726_vm11  ;;  %vm1707_vm8 = vcmp.ge.s32.totalorder %v1656_v18, %v3679_v9  ;;  %vm1757_vm15 = vcmp.lt.s32.totalorder %v1656_v18, %v3681_v50 }
 0x3c2   : > { %vm1775_vm2 = vmand %vm1677_vm12, %vm1727_vm13  ;;  %vm1695_vm13 = vcmp.ge.s32.totalorder %v1644_v6, %v3679_v9 }
 0x3c3   : > { %vm2890_vm1 = vmpackc.low %vm1775_vm2, %vm1774_vm0  ;;  %vm1728_vm0 = vcmp.lt.s32.totalorder %v1627_v45, %v3681_v50 }
 0x3c4   : > { %2887 = vmatpush3.bf16.msk.msra.mxu0 %vm2886_vm10, %v3061_v61  ;;  %vm1804_vm11 = vmand %vm1706_vm14, %vm1756_vm7  ;;  %vm1744_vm10 = vcmp.lt.s32.totalorder %v1643_v19, %v3681_v50  ;;  %vm1729_vm14 = vcmp.lt.s32.totalorder %v1628_v51, %v3681_v50 }
 0x3c5   : > { %2889 = vmatprep.subr.msk.bf16.mxu0 %vm2888_vm6, %v3061_v61  ;;  %vm1805_vm12 = vmand %vm1707_vm8, %vm1757_vm15  ;;  %vm1678_vm6 = vcmp.ge.s32.totalorder %v1627_v45, %v3679_v9  ;;  %vm1708_vm15 = vcmp.ge.s32.totalorder %v1657_v29, %v3679_v9 }
 0x3c6   : > { %vm2912_vm5 = vmpackc.low %vm1805_vm12, %vm1804_vm11  ;;  %vm1758_vm11 = vcmp.lt.s32.totalorder %v1657_v29, %v3681_v50  ;;  %vm1759_vm12 = vcmp.lt.s32.totalorder %v1658_v41, %v3681_v50 }
 0x3c7   : > { %2913 = vmatpush3.bf16.msk.msra.mxu1 %vm2912_vm5, %v3061_v61  ;;  %vm1792_vm9 = vmand %vm1694_vm3, %vm1744_vm10  ;;  %vm1709_vm10 = vcmp.ge.s32.totalorder %v1658_v41, %v3679_v9  ;;  %vm1710_vm5 = vcmp.ge.s32.totalorder %v1659_v8, %v3679_v9 }
 0x3c8   : > { %2891 = vmatpush3.bf16.msk.msra.mxu0 %vm2890_vm1, %v3061_v61  ;;  %vm1793_vm2 = vmand %vm1695_vm13, %vm1745_vm4  ;;  %vm1679_vm1 = vcmp.ge.s32.totalorder %v1628_v51, %v3679_v9  ;;  %2914 = vmatprep.subr.bf16.mxu1 %v3058_v27 }
 0x3c9   : > { %vm2892_vm8 = vmpackc.low %vm1793_vm2, %vm1792_vm9  ;;  %vm1760_vm9 = vcmp.lt.s32.totalorder %v1659_v8, %v3681_v50  ;;  %vm1761_vm2 = vcmp.lt.s32.totalorder %v1660_v30, %v3681_v50 }
 0x3ca   : > { %2893 = vmatprep.subr.msk.bf16.mxu0 %vm2892_vm8, %v3061_v61  ;;  %vm1776_vm7 = vmand %vm1678_vm6, %vm1728_vm0  ;;  %vm1711_vm0 = vcmp.ge.s32.totalorder %v1660_v30, %v3679_v9 }
 0x3cb   : > { %vm1777_vm3 = vmand %vm1679_vm1, %vm1729_vm14 }
 0x3cc   : > { %vm2894_vm13 = vmpackc.low %vm1777_vm3, %vm1776_vm7 }
 0x3cd   : > { %2895 = vmatpush3.bf16.msk.msra.mxu0 %vm2894_vm13, %v3061_v61  ;;  %vm1806_vm4 = vmand %vm1708_vm15, %vm1758_vm11  ;;  %vm2012_vm15 = vcmask 130048   ;;  %vm2020_vm11 = vcmask 1040384  }
 0x3ce   : > { %vm1807_vm6 = vmand %vm1709_vm10, %vm1759_vm12 }
 0x3cf   : > { %vm2915_vm8 = vmpackc.low %vm1807_vm6, %vm1806_vm4 }
 0x3d0   : > { %2916 = vmatpush3.bf16.msk.msra.mxu1 %vm2915_vm8, %v3061_v61  ;;  %vm1808_vm1 = vmand %vm1710_vm5, %vm1760_vm9 }
 0x3d1   : > { %2917 = vmatprep.subr.bf16.mxu1 %v3058_v27  ;;  %vm1809_vm14 = vmand %vm1711_vm0, %vm1761_vm2 }
 0x3d2   : > { %vm2918_vm7 = vmpackc.low %vm1809_vm14, %vm1808_vm1 }
 0x3d4   : > { %2919 = vmatpush3.bf16.msk.msra.mxu1 %vm2918_vm7, %v3061_v61 }
 0x430   : > { %v1860_v32 = vpop.permute.xlu1 %1859 }
 0x479   : > { %v1508_v17 = vpop.f32.mrb[20].mxu0 }
 0x47a   : > { %v1865_v26 = vrot.slane %v1508_v17, 1  ;;  %v1510_v9 = vpop.f32.mrb[21].mxu0  ;;  %v1588_v38 = vadd.f32 %v1586_v63, %v1508_v17 }
 0x47b   : > { %v1866_v28 = vrot.slane %v1510_v9, 1  ;;  %v1589_v37 = vadd.f32 %v1586_v63, %v1510_v9 }
 0x47c   : > { %v1609_v57 = vadd.f32 %v1597_v0, %v1588_v38 }
 0x47d   : > { %1935 = vmatprep.mubr.f32.mxu0 %v1866_v28  ;;  %v1610_v56 = vadd.f32 %v1601_v35, %v1589_v37 }
 0x47e   : > { %1936 = vmatmul.mubr.f32.vlgmr.msra.gmra.mrb[24].mxu0 %v1865_v26 }
 0x47f   : > { %v2022_v58 = vsel %vm2020_vm11, %v1610_v56, %v2017_v10 }
 0x481   : > { %v1579_v50 = vpop.f32.mrb[22].mxu0 }
 0x482   : > { %v1867_v11 = vrot.slane %v1579_v50, 1  ;;  %v2478_v22 = vpop.f32.mrb[23].mxu0  ;;  %v1590_v53 = vadd.f32 %v1586_v63, %v1579_v50 }
 0x484   : > { %2512 = vmatmul.mubr.f32.vlgmr.msra.gmra.mrb[32].mxu1 %v1867_v11  ;;  %v1611_v5 = vadd.f32 %v1605_v21, %v1590_v53 }
 0x486   : > { %v2023_v55 = vsel %vm2020_vm11, %v1611_v5, %v2017_v10 }
 0x487   : > { %v2041_v2 = vrot.slane %v2023_v55, %v2033_v43 }
 0x551   : > { %v2358_v27 = vpop.f32.mrb[24].mxu0 }
 0x552   : > { %v2359_v59 = vpop.f32.mrb[25].mxu0 }
 0x553   : > { %v2360_v61 = vadd.f32 %v2359_v59, %v2358_v27 }
 0x555   : > { %v1938_v36 = vadd.f32 %v2360_v61, %v1860_v32 }
 0x557   : > { %v2007_v39 = vpop.f32.mrb[32].mxu1 }
 0x558   : > { %v2008_v46 = vadd.f32 %v2007_v39, %v1938_v36  ;;  %v2513_v52 = vpop.f32.mrb[33].mxu1 }
 0x55a   : > { %3003 = vtanh.f32 %v2008_v46 }
 0x564   : > { %v3004_v15 = vpop.eup %3003 }
 0x565   : > { %v2013_v24 = vsel %vm2012_vm15, %v3004_v15, 0.0 }
 0x566   : > { %v2016_v31 = vrot.slane %v2013_v24, 7 }
 0x568   : > { %v2021_v25 = vsel %vm2020_vm11, %v1609_v57, %v2016_v31 }
 0x569   : > { %v2027_v40 = vcombine.low %v2021_v25, %v2022_v58 }
 0x56b   : > { %v2034_v7 = vrot.slane %v2027_v40, %v2033_v43 }
 0x56d   : > { %v2042_v13 = vcombine.low %v2034_v7, %v2041_v2 }
 0x56f   : > { %2044 = vst [vmem:[%s187_s6] sm:$0x3f] %v2042_v13 }
 0x570 PF: > { %s14_s12 = sadd.s32 1, %s3047_s12  }
 0x571   : > { %p11_p3 = scmp.ge.s32.totalorder %s14_s12, 6  }
 0x573   :  { %13 = sbr.rel (!%p11_p3) target bundleno = 1 (0x1), region = 70 }
 0x57a   :  { %2067 = vsyncpa [#allocation3], 1 }
 0x57b   :  { %2069 = vsyncpa [#allocation3 + $0x1], 1 }

</bundles_post_ra>
